<compile_context>
chip_gen: v7x
topology: tpu7x:2x2x1
jax: 0.10.0
libtpu: 0.0.40
codegen_flags: <defaults>
</compile_context>

<pallas_src>
import functools
import math

import jax
import jax.numpy as jnp
from jax.experimental import pallas as pl
from jax.experimental.pallas import tpu as pltpu

LEAKY_SLOPE = 0.01  # torch.nn.LeakyReLU default negative_slope
_VMEM_LIMIT = 40 * 1024 * 1024

# (c_in, c_out, kernel, stride, groups, apply_leaky_relu_after)
LAYER_CFGS = [
    (1,    16,   15, 1, 1,   True),
    (16,   64,   41, 4, 4,   True),
    (64,   256,  41, 4, 16,  True),
    (256,  1024, 41, 4, 64,  True),
    (1024, 1024, 41, 4, 256, True),
    (1024, 1024, 5,  1, 1,   True),
    (1024, 1,    3,  1, 1,   False),
]


# ---------------------------------------------------------------------------
# Layer 0: Conv1d(1, 16, k=15, s=1) with L on the lane axis (lane-dense).
# ---------------------------------------------------------------------------
def _conv0_kernel(x_ref, w_ref, b_ref, o_ref, *, tl, kk):
    # x_ref: (1, 1, Lp) f32, w_ref: (16, K) f32, b_ref: (16, 1) f32
    # o_ref: (1, 16, tl) bf16
    t = pl.program_id(1)
    l0 = pl.multiple_of(t * tl, tl)                      # lane-aligned start
    xwin = x_ref[0, :, pl.ds(l0, tl + kk - 1)]           # (1, tl+K-1)
    c_out = o_ref.shape[1]
    acc = jnp.zeros((c_out, tl), jnp.float32)
    for k in range(kk):                                  # register accumulation
        acc = acc + w_ref[:, k:k + 1] * xwin[:, k:k + tl]
    y = acc + b_ref[...]
    y = jnp.where(y >= 0, y, LEAKY_SLOPE * y)
    o_ref[0] = y.astype(o_ref.dtype)


@jax.jit
def conv0(x_ncl, w, b):
    """First Conv1d(1,16,15) + LeakyReLU.  Returns channels-last (N, L_out, 16)."""
    n, _, l_in = x_ncl.shape
    c_out, _, kk = w.shape
    l_out = l_in - kk + 1
    tl = 512
    n_t = pl.cdiv(l_out, tl)
    l_out_pad = n_t * tl
    lp = l_out_pad + kk - 1
    x0 = jnp.pad(x_ncl.astype(jnp.float32), ((0, 0), (0, 0), (0, lp - l_in)))
    w2 = w.reshape(c_out, kk).astype(jnp.float32)
    b2 = b.reshape(c_out, 1).astype(jnp.float32)

    out = pl.pallas_call(
        functools.partial(_conv0_kernel, tl=tl, kk=kk),
        out_shape=jax.ShapeDtypeStruct((n, c_out, l_out_pad), jnp.bfloat16),
        grid=(n, n_t),
        in_specs=[
            pl.BlockSpec((1, 1, lp), lambda i, t: (i, 0, 0)),
            pl.BlockSpec((c_out, kk), lambda i, t: (0, 0)),
            pl.BlockSpec((c_out, 1), lambda i, t: (0, 0)),
        ],
        out_specs=pl.BlockSpec((1, c_out, tl), lambda i, t: (i, 0, t)),
        compiler_params=pltpu.CompilerParams(
            dimension_semantics=("parallel", "arbitrary"),
            vmem_limit_bytes=_VMEM_LIMIT),
    )(x0, w2, b2)
    return jnp.transpose(out[:, :, :l_out], (0, 2, 1))   # (N, L_out, 16) bf16


# ---------------------------------------------------------------------------
# Grouped strided layers 1-4: compact polyphase input, in-VMEM replication,
# register-accumulated tap loop, contiguous cig-fold.
# ---------------------------------------------------------------------------
def _grouped_kernel(x_ref, w_ref, b_ref, o_ref, xe_ref, *,
                    stride, groups, cog, tl, kk, leaky, c_out):
    # x_ref : (stride, 1, lq_pad, c_in)  bf16 (compact, c-major channel order)
    # w_ref : (K, cog*c_in)              f32  lane = r*c_in + c*groups + g
    # b_ref : (1, c_out)                 f32  (permuted channel order r*groups+g)
    # o_ref : (1, tl, c_out_pad)         bf16
    # xe_ref: (stride, tl + qmax, cog*c_in) f32 scratch
    c_in = x_ref.shape[-1]
    cc = w_ref.shape[-1]
    tlw = xe_ref.shape[1]
    cig = c_in // groups

    t = pl.program_id(1)
    l0 = pl.multiple_of(t * tl, tl)

    # (1) Expand the compact window into VMEM once per grid step.
    #     Also hoists the bf16->f32 cast out of the 41-tap loop.
    for p in range(stride):
        xw = x_ref[p, 0, pl.ds(l0, tlw), :].astype(jnp.float32)     # (tlw, c_in)
        for r in range(cog):
            xe_ref[p, :, r * c_in:(r + 1) * c_in] = xw

    # (2) Tap loop with register accumulation (single write-back at the end).
    acc = jnp.zeros((tl, cc), jnp.float32)
    for k in range(kk):
        p, q0 = k % stride, k // stride
        acc = acc + xe_ref[p, q0:q0 + tl, :] * w_ref[k:k + 1, :]

    # (3) Fold the cig partial sums (contiguous `groups`-wide sub-chunks),
    #     assemble permuted output channels, bias + LeakyReLU.
    pieces = []
    for r in range(cog):
        base = r * c_in
        yr = acc[:, base:base + groups]
        for c in range(1, cig):
            yr = yr + acc[:, base + c * groups:base + (c + 1) * groups]
        pieces.append(yr)
    y = pieces[0] if cog == 1 else jnp.concatenate(pieces, axis=-1)  # (tl, c_out)
    y = y + b_ref[...]
    if leaky:
        y = jnp.where(y >= 0, y, LEAKY_SLOPE * y)
    c_pad = o_ref.shape[-1]
    if c_pad != c_out:                                   # lane-dense store (layer 1)
        y = jnp.concatenate([y, jnp.zeros((tl, c_pad - c_out), y.dtype)], axis=-1)
    o_ref[0] = y.astype(o_ref.dtype)


@functools.partial(jax.jit, static_argnames=("stride", "groups", "leaky"))
def grouped_conv1d(x_nlc, w, b, *, stride, groups, leaky):
    """Grouped strided Conv1d (VALID) on channels-last input."""
    n, l_in, c_in = x_nlc.shape
    c_out, cig, kk = w.shape
    assert c_in == cig * groups
    cog = c_out // groups
    cc = cog * c_in                                       # == cig * c_out
    qmax = pl.cdiv(kk - 1, stride)
    l_out = (l_in - kk) // stride + 1
    tl = max(8, (32768 // cc) // 8 * 8)                   # acc stays <= ~32 vregs
    n_t = pl.cdiv(l_out, tl)
    l_out_pad = n_t * tl
    lq_pad = l_out_pad + qmax
    tlw = tl + qmax
    c_pad = max(c_out, 128)

    # Compact polyphase input with c-major channel order: [g, c] -> [c, g].
    xb = x_nlc.astype(jnp.bfloat16)
    xb = xb.reshape(n, l_in, groups, cig).transpose(0, 1, 3, 2).reshape(n, l_in, c_in)
    t_pad = lq_pad * stride
    xb = jnp.pad(xb, ((0, 0), (0, t_pad - l_in), (0, 0)))
    xp = xb.reshape(n, lq_pad, stride, c_in).transpose(2, 0, 1, 3)   # (s,N,lq,c_in)

    # Compact weight: W[k, r*c_in + c*groups + g] = w_torch[g*cog + r, c, k]
    w4 = w.reshape(groups, cog, cig, kk)
    wr = jnp.transpose(w4, (3, 1, 2, 0)).reshape(kk, cc).astype(jnp.float32)
    # Bias in permuted channel order jP = r*groups + g.
    bp = b.reshape(groups, cog).T.reshape(1, c_out).astype(jnp.float32)

    out = pl.pallas_call(
        functools.partial(_grouped_kernel, stride=stride, groups=groups, cog=cog,
                          tl=tl, kk=kk, leaky=leaky, c_out=c_out),
        out_shape=jax.ShapeDtypeStruct((n, l_out_pad, c_pad), jnp.bfloat16),
        grid=(n, n_t),
        in_specs=[
            pl.BlockSpec((stride, 1, lq_pad, c_in), lambda i, t: (0, i, 0, 0)),
            pl.BlockSpec((kk, cc), lambda i, t: (0, 0)),
            pl.BlockSpec((1, c_out), lambda i, t: (0, 0)),
        ],
        out_specs=pl.BlockSpec((1, tl, c_pad), lambda i, t: (i, t, 0)),
        scratch_shapes=[pltpu.VMEM((stride, tlw, cc), jnp.float32)],
        compiler_params=pltpu.CompilerParams(
            dimension_semantics=("parallel", "arbitrary"),
            vmem_limit_bytes=_VMEM_LIMIT),
    )(xp, wr, bp)

    # Slice valid region and restore natural channel order (g*cog + r).
    out = out[:, :l_out, :c_out]
    out = out.reshape(n, l_out, cog, groups).transpose(0, 1, 3, 2).reshape(n, l_out, c_out)
    return out


# ---------------------------------------------------------------------------
# Fused dense tail (layers 5 + 6): one im2col MXU matmul + in-kernel final conv.
# ---------------------------------------------------------------------------
def _tail_kernel(x_ref, w5_ref, b5_ref, w6_ref, b6_ref, o_ref, *, l5):
    # x_ref : (N*l5, K5*C) bf16 im2col of layer-5 input
    # w5_ref: (K5*C, C)    bf16 ; b5_ref: (1, C) f32
    # w6_ref: (N*l5, C)    f32  per-row layer-6 weight ; b6_ref: (1, 1) f32
    # o_ref : (N, 1)       f32
    y = jnp.dot(x_ref[...], w5_ref[...], preferred_element_type=jnp.float32)
    y = y + b5_ref[...]
    y = jnp.where(y >= 0, y, LEAKY_SLOPE * y)             # layer-5 LeakyReLU
    t = jnp.sum(y * w6_ref[...], axis=-1, keepdims=True)  # per (n, l) partial dot
    n = o_ref.shape[0]
    parts = [jnp.sum(t[i * l5:(i + 1) * l5, :], axis=0, keepdims=True)
             for i in range(n)]
    z = parts[0] if n == 1 else jnp.concatenate(parts, axis=0)
    o_ref[...] = z + b6_ref[...]


@jax.jit
def tail_dense(x_nlc, w5, b5, w6, b6):
    """Conv1d(1024,1024,5)+LeakyReLU then Conv1d(1024,1,3), fused in one call."""
    n, l_in, c_in = x_nlc.shape
    c5, _, k5 = w5.shape
    _, _, k6 = w6.shape
    l5 = l_in - k5 + 1
    assert l5 - k6 + 1 == 1, "fused tail assumes the final conv output length is 1"

    xb = x_nlc.astype(jnp.bfloat16)
    x5 = jnp.concatenate([xb[:, k:k + l5, :] for k in range(k5)], axis=-1)
    x5 = x5.reshape(n * l5, k5 * c_in)                            # im2col rows
    w5r = jnp.transpose(w5, (2, 1, 0)).reshape(k5 * c_in, c5).astype(jnp.bfloat16)
    b5r = b5.reshape(1, c5).astype(jnp.float32)
    w6r = jnp.tile(jnp.transpose(w6[0], (1, 0)), (n, 1)).astype(jnp.float32)  # (n*l5, C)
    b6r = b6.reshape(1, 1).astype(jnp.float32)

    out = pl.pallas_call(
        functools.partial(_tail_kernel, l5=l5),
        out_shape=jax.ShapeDtypeStruct((n, 1), jnp.float32),
        grid=(1,),
        in_specs=[
            pl.BlockSpec((n * l5, k5 * c_in), lambda i: (0, 0)),
            pl.BlockSpec((k5 * c_in, c5), lambda i: (0, 0)),
            pl.BlockSpec((1, c5), lambda i: (0, 0)),
            pl.BlockSpec((n * l5, c_in), lambda i: (0, 0)),
            pl.BlockSpec((1, 1), lambda i: (0, 0)),
        ],
        out_specs=pl.BlockSpec((n, 1), lambda i: (0, 0)),
        compiler_params=pltpu.CompilerParams(
            dimension_semantics=("arbitrary",),
            vmem_limit_bytes=_VMEM_LIMIT),
    )(x5, w5r, b5r, w6r, b6r)
    return out.reshape(n, 1, 1)                                   # NCL like torch


# ---------------------------------------------------------------------------
# Parameters, pure-JAX reference, main.
# ---------------------------------------------------------------------------
def init_params(key):
    """PyTorch-default-style init (uniform +/- 1/sqrt(fan_in))."""
    params = []
    for (c_in, c_out, k, _s, g, _leaky) in LAYER_CFGS:
        key, kw, kb = jax.random.split(key, 3)
        cig = c_in // g
        bound = 1.0 / math.sqrt(cig * k)
        w = jax.random.uniform(kw, (c_out, cig, k), jnp.float32, -bound, bound)
        b = jax.random.uniform(kb, (c_out,), jnp.float32, -bound, bound)
        params.append((w, b))
    return params


def ref_conv_layer(x_ncl, w, b, *, stride, groups, leaky):
    y = jax.lax.conv_general_dilated(
        x_ncl, w, window_strides=(stride,), padding="VALID",
        dimension_numbers=("NCH", "OIH", "NCH"),
        feature_group_count=groups,
        precision=jax.lax.Precision.HIGHEST)
    y = y + b[None, :, None]
    if leaky:
        y = jnp.where(y >= 0, y, LEAKY_SLOPE * y)
    return y


def _check(name, got_nlc, ref_ncl, tol):
    ref_nlc = jnp.transpose(ref_ncl, (0, 2, 1)).astype(jnp.float32)
    got = got_nlc.astype(jnp.float32)
    num = float(jnp.linalg.norm(got - ref_nlc))
    den = float(jnp.linalg.norm(ref_nlc)) + 1e-12
    rel = num / den
    assert rel < tol, f"{name}: rel err {rel:.3e} (tol {tol})"


if __name__ == "__main__":
    key = jax.random.PRNGKey(0)
    pkey, xkey = jax.random.split(key)
    params = init_params(pkey)

    # Minimum length such that every VALID conv in the stack keeps >= 1 sample.
    N, L = 2, 4951
    x = jax.random.normal(xkey, (N, 1, L), dtype=jnp.float32)     # NCL like torch

    # Pure-JAX reference (f32, XLA convs).
    ref = x
    refs = []
    for cfg, (w, b) in zip(LAYER_CFGS, params):
        _, _, _, s, g, leaky = cfg
        ref = ref_conv_layer(ref, w, b, stride=s, groups=g, leaky=leaky)
        refs.append(ref)

    # Pallas path.
    h = conv0(x, params[0][0], params[0][1])                      # (N, L0, 16) bf16
    _check("layer0", h, refs[0], 2.5e-2)
    for li in range(1, 5):
        _, _, _, s, g, leaky = LAYER_CFGS[li]
        h = grouped_conv1d(h, params[li][0], params[li][1],
                           stride=s, groups=g, leaky=leaky)
        _check(f"layer{li}", h, refs[li], 2.5e-2)

    out = tail_dense(h, params[5][0], params[5][1], params[6][0], params[6][1])
    jax.block_until_ready(out)
    assert out.shape == (N, 1, 1)
    _check("tail", jnp.transpose(out, (0, 2, 1)), refs[6], 4e-2)

    print("KERNEL_OK")
</pallas_src>

<mosaic_0001>
module attributes {stable_mosaic.version = 11 : i64} {
  func.func @_conv0_kernel(%arg0: i32, %arg1: i32, %arg2: memref<1x1x5134xf32, #tpu.memory_space<vmem>>, %arg3: memref<16x15xf32, #tpu.memory_space<vmem>>, %arg4: memref<16x1xf32, #tpu.memory_space<vmem>>, %arg5: memref<1x16x512xbf16, #tpu.memory_space<vmem>>) attributes {dimension_semantics = [#tpu.dimension_semantics<parallel>, #tpu.dimension_semantics<arbitrary>], iteration_bounds = array<i64: 2, 10>, scalar_prefetch = 0 : i64, scratch_operands = 0 : i64, tpu.core_type = #tpu.core_type<tc>, window_params = [{transform_indices = @transform_0, window_bounds = array<i64: 1, 1, 5134>}, {pipeline_mode = #tpu.pipeline_mode<synchronous>, transform_indices = @transform_1, window_bounds = array<i64: 16, 15>}, {pipeline_mode = #tpu.pipeline_mode<synchronous>, transform_indices = @transform_2, window_bounds = array<i64: 16, 1>}, {transform_indices = @transform_3, window_bounds = array<i64: 1, 16, 512>}]} {
    %c512_i32 = arith.constant 512 : i32
    %0 = arith.muli %arg1, %c512_i32 : i32
    %1 = tpu.assume_multiple %0, 512 : i32
    %c0 = arith.constant 0 : index
    %c0_0 = arith.constant 0 : index
    %2 = arith.index_cast %1 : i32 to index
    %3 = vector.load %arg2[%c0, %c0_0, %2] : memref<1x1x5134xf32, #tpu.memory_space<vmem>>, vector<1x1x526xf32>
    %4 = vector.shape_cast %3 : vector<1x1x526xf32> to vector<1x526xf32>
    %cst = arith.constant 0.000000e+00 : f32
    %5 = vector.broadcast %cst : f32 to vector<16x512xf32>
    %c0_1 = arith.constant 0 : index
    %c0_2 = arith.constant 0 : index
    %6 = vector.load %arg3[%c0_1, %c0_2] : memref<16x15xf32, #tpu.memory_space<vmem>>, vector<16x1xf32>
    %7 = vector.extract_strided_slice %4 {offsets = [0, 0], sizes = [1, 512], strides = [1, 1]} : vector<1x526xf32> to vector<1x512xf32>
    %8 = vector.broadcast %6 : vector<16x1xf32> to vector<16x512xf32>
    %9 = vector.broadcast %7 : vector<1x512xf32> to vector<16x512xf32>
    %10 = arith.mulf %8, %9 : vector<16x512xf32>
    %11 = arith.addf %5, %10 : vector<16x512xf32>
    %c0_3 = arith.constant 0 : index
    %c1 = arith.constant 1 : index
    %12 = vector.load %arg3[%c0_3, %c1] : memref<16x15xf32, #tpu.memory_space<vmem>>, vector<16x1xf32>
    %13 = vector.extract_strided_slice %4 {offsets = [0, 1], sizes = [1, 512], strides = [1, 1]} : vector<1x526xf32> to vector<1x512xf32>
    %14 = vector.broadcast %12 : vector<16x1xf32> to vector<16x512xf32>
    %15 = vector.broadcast %13 : vector<1x512xf32> to vector<16x512xf32>
    %16 = arith.mulf %14, %15 : vector<16x512xf32>
    %17 = arith.addf %11, %16 : vector<16x512xf32>
    %c0_4 = arith.constant 0 : index
    %c2 = arith.constant 2 : index
    %18 = vector.load %arg3[%c0_4, %c2] : memref<16x15xf32, #tpu.memory_space<vmem>>, vector<16x1xf32>
    %19 = vector.extract_strided_slice %4 {offsets = [0, 2], sizes = [1, 512], strides = [1, 1]} : vector<1x526xf32> to vector<1x512xf32>
    %20 = vector.broadcast %18 : vector<16x1xf32> to vector<16x512xf32>
    %21 = vector.broadcast %19 : vector<1x512xf32> to vector<16x512xf32>
    %22 = arith.mulf %20, %21 : vector<16x512xf32>
    %23 = arith.addf %17, %22 : vector<16x512xf32>
    %c0_5 = arith.constant 0 : index
    %c3 = arith.constant 3 : index
    %24 = vector.load %arg3[%c0_5, %c3] : memref<16x15xf32, #tpu.memory_space<vmem>>, vector<16x1xf32>
    %25 = vector.extract_strided_slice %4 {offsets = [0, 3], sizes = [1, 512], strides = [1, 1]} : vector<1x526xf32> to vector<1x512xf32>
    %26 = vector.broadcast %24 : vector<16x1xf32> to vector<16x512xf32>
    %27 = vector.broadcast %25 : vector<1x512xf32> to vector<16x512xf32>
    %28 = arith.mulf %26, %27 : vector<16x512xf32>
    %29 = arith.addf %23, %28 : vector<16x512xf32>
    %c0_6 = arith.constant 0 : index
    %c4 = arith.constant 4 : index
    %30 = vector.load %arg3[%c0_6, %c4] : memref<16x15xf32, #tpu.memory_space<vmem>>, vector<16x1xf32>
    %31 = vector.extract_strided_slice %4 {offsets = [0, 4], sizes = [1, 512], strides = [1, 1]} : vector<1x526xf32> to vector<1x512xf32>
    %32 = vector.broadcast %30 : vector<16x1xf32> to vector<16x512xf32>
    %33 = vector.broadcast %31 : vector<1x512xf32> to vector<16x512xf32>
    %34 = arith.mulf %32, %33 : vector<16x512xf32>
    %35 = arith.addf %29, %34 : vector<16x512xf32>
    %c0_7 = arith.constant 0 : index
    %c5 = arith.constant 5 : index
    %36 = vector.load %arg3[%c0_7, %c5] : memref<16x15xf32, #tpu.memory_space<vmem>>, vector<16x1xf32>
    %37 = vector.extract_strided_slice %4 {offsets = [0, 5], sizes = [1, 512], strides = [1, 1]} : vector<1x526xf32> to vector<1x512xf32>
    %38 = vector.broadcast %36 : vector<16x1xf32> to vector<16x512xf32>
    %39 = vector.broadcast %37 : vector<1x512xf32> to vector<16x512xf32>
    %40 = arith.mulf %38, %39 : vector<16x512xf32>
    %41 = arith.addf %35, %40 : vector<16x512xf32>
    %c0_8 = arith.constant 0 : index
    %c6 = arith.constant 6 : index
    %42 = vector.load %arg3[%c0_8, %c6] : memref<16x15xf32, #tpu.memory_space<vmem>>, vector<16x1xf32>
    %43 = vector.extract_strided_slice %4 {offsets = [0, 6], sizes = [1, 512], strides = [1, 1]} : vector<1x526xf32> to vector<1x512xf32>
    %44 = vector.broadcast %42 : vector<16x1xf32> to vector<16x512xf32>
    %45 = vector.broadcast %43 : vector<1x512xf32> to vector<16x512xf32>
    %46 = arith.mulf %44, %45 : vector<16x512xf32>
    %47 = arith.addf %41, %46 : vector<16x512xf32>
    %c0_9 = arith.constant 0 : index
    %c7 = arith.constant 7 : index
    %48 = vector.load %arg3[%c0_9, %c7] : memref<16x15xf32, #tpu.memory_space<vmem>>, vector<16x1xf32>
    %49 = vector.extract_strided_slice %4 {offsets = [0, 7], sizes = [1, 512], strides = [1, 1]} : vector<1x526xf32> to vector<1x512xf32>
    %50 = vector.broadcast %48 : vector<16x1xf32> to vector<16x512xf32>
    %51 = vector.broadcast %49 : vector<1x512xf32> to vector<16x512xf32>
    %52 = arith.mulf %50, %51 : vector<16x512xf32>
    %53 = arith.addf %47, %52 : vector<16x512xf32>
    %c0_10 = arith.constant 0 : index
    %c8 = arith.constant 8 : index
    %54 = vector.load %arg3[%c0_10, %c8] : memref<16x15xf32, #tpu.memory_space<vmem>>, vector<16x1xf32>
    %55 = vector.extract_strided_slice %4 {offsets = [0, 8], sizes = [1, 512], strides = [1, 1]} : vector<1x526xf32> to vector<1x512xf32>
    %56 = vector.broadcast %54 : vector<16x1xf32> to vector<16x512xf32>
    %57 = vector.broadcast %55 : vector<1x512xf32> to vector<16x512xf32>
    %58 = arith.mulf %56, %57 : vector<16x512xf32>
    %59 = arith.addf %53, %58 : vector<16x512xf32>
    %c0_11 = arith.constant 0 : index
    %c9 = arith.constant 9 : index
    %60 = vector.load %arg3[%c0_11, %c9] : memref<16x15xf32, #tpu.memory_space<vmem>>, vector<16x1xf32>
    %61 = vector.extract_strided_slice %4 {offsets = [0, 9], sizes = [1, 512], strides = [1, 1]} : vector<1x526xf32> to vector<1x512xf32>
    %62 = vector.broadcast %60 : vector<16x1xf32> to vector<16x512xf32>
    %63 = vector.broadcast %61 : vector<1x512xf32> to vector<16x512xf32>
    %64 = arith.mulf %62, %63 : vector<16x512xf32>
    %65 = arith.addf %59, %64 : vector<16x512xf32>
    %c0_12 = arith.constant 0 : index
    %c10 = arith.constant 10 : index
    %66 = vector.load %arg3[%c0_12, %c10] : memref<16x15xf32, #tpu.memory_space<vmem>>, vector<16x1xf32>
    %67 = vector.extract_strided_slice %4 {offsets = [0, 10], sizes = [1, 512], strides = [1, 1]} : vector<1x526xf32> to vector<1x512xf32>
    %68 = vector.broadcast %66 : vector<16x1xf32> to vector<16x512xf32>
    %69 = vector.broadcast %67 : vector<1x512xf32> to vector<16x512xf32>
    %70 = arith.mulf %68, %69 : vector<16x512xf32>
    %71 = arith.addf %65, %70 : vector<16x512xf32>
    %c0_13 = arith.constant 0 : index
    %c11 = arith.constant 11 : index
    %72 = vector.load %arg3[%c0_13, %c11] : memref<16x15xf32, #tpu.memory_space<vmem>>, vector<16x1xf32>
    %73 = vector.extract_strided_slice %4 {offsets = [0, 11], sizes = [1, 512], strides = [1, 1]} : vector<1x526xf32> to vector<1x512xf32>
    %74 = vector.broadcast %72 : vector<16x1xf32> to vector<16x512xf32>
    %75 = vector.broadcast %73 : vector<1x512xf32> to vector<16x512xf32>
    %76 = arith.mulf %74, %75 : vector<16x512xf32>
    %77 = arith.addf %71, %76 : vector<16x512xf32>
    %c0_14 = arith.constant 0 : index
    %c12 = arith.constant 12 : index
    %78 = vector.load %arg3[%c0_14, %c12] : memref<16x15xf32, #tpu.memory_space<vmem>>, vector<16x1xf32>
    %79 = vector.extract_strided_slice %4 {offsets = [0, 12], sizes = [1, 512], strides = [1, 1]} : vector<1x526xf32> to vector<1x512xf32>
    %80 = vector.broadcast %78 : vector<16x1xf32> to vector<16x512xf32>
    %81 = vector.broadcast %79 : vector<1x512xf32> to vector<16x512xf32>
    %82 = arith.mulf %80, %81 : vector<16x512xf32>
    %83 = arith.addf %77, %82 : vector<16x512xf32>
    %c0_15 = arith.constant 0 : index
    %c13 = arith.constant 13 : index
    %84 = vector.load %arg3[%c0_15, %c13] : memref<16x15xf32, #tpu.memory_space<vmem>>, vector<16x1xf32>
    %85 = vector.extract_strided_slice %4 {offsets = [0, 13], sizes = [1, 512], strides = [1, 1]} : vector<1x526xf32> to vector<1x512xf32>
    %86 = vector.broadcast %84 : vector<16x1xf32> to vector<16x512xf32>
    %87 = vector.broadcast %85 : vector<1x512xf32> to vector<16x512xf32>
    %88 = arith.mulf %86, %87 : vector<16x512xf32>
    %89 = arith.addf %83, %88 : vector<16x512xf32>
    %c0_16 = arith.constant 0 : index
    %c14 = arith.constant 14 : index
    %90 = vector.load %arg3[%c0_16, %c14] : memref<16x15xf32, #tpu.memory_space<vmem>>, vector<16x1xf32>
    %91 = vector.extract_strided_slice %4 {offsets = [0, 14], sizes = [1, 512], strides = [1, 1]} : vector<1x526xf32> to vector<1x512xf32>
    %92 = vector.broadcast %90 : vector<16x1xf32> to vector<16x512xf32>
    %93 = vector.broadcast %91 : vector<1x512xf32> to vector<16x512xf32>
    %94 = arith.mulf %92, %93 : vector<16x512xf32>
    %95 = arith.addf %89, %94 : vector<16x512xf32>
    %c0_17 = arith.constant 0 : index
    %c0_18 = arith.constant 0 : index
    %96 = vector.load %arg4[%c0_17, %c0_18] : memref<16x1xf32, #tpu.memory_space<vmem>>, vector<16x1xf32>
    %97 = vector.broadcast %96 : vector<16x1xf32> to vector<16x512xf32>
    %98 = arith.addf %95, %97 : vector<16x512xf32>
    %cst_19 = arith.constant 0.000000e+00 : f32
    %99 = vector.broadcast %cst_19 : f32 to vector<16x512xf32>
    %100 = arith.cmpf oge, %98, %99 : vector<16x512xf32>
    %cst_20 = arith.constant 0.00999999977 : f32
    %101 = vector.broadcast %cst_20 : f32 to vector<16x512xf32>
    %102 = arith.mulf %101, %98 : vector<16x512xf32>
    %103 = arith.select %100, %98, %102 : vector<16x512xi1>, vector<16x512xf32>
    %104 = arith.truncf %103 : vector<16x512xf32> to vector<16x512xbf16>
    %c0_21 = arith.constant 0 : index
    %c0_22 = arith.constant 0 : index
    %c0_23 = arith.constant 0 : index
    %105 = vector.load %arg5[%c0_21, %c0_22, %c0_23] : memref<1x16x512xbf16, #tpu.memory_space<vmem>>, vector<1x16x512xbf16>
    %106 = vector.shape_cast %105 : vector<1x16x512xbf16> to vector<16x512xbf16>
    %107 = vector.shape_cast %104 : vector<16x512xbf16> to vector<1x16x512xbf16>
    tpu.vector_store %arg5[%c0_21, %c0_22, %c0_23], %107 {strides = array<i32>} : memref<1x16x512xbf16, #tpu.memory_space<vmem>>, vector<1x16x512xbf16>,
    return
  }
  func.func @transform_0(%arg0: i32, %arg1: i32) -> (i32, i32, i32) {
    %c0_i32 = arith.constant 0 : i32
    %c0_i32_0 = arith.constant 0 : i32
    %c0_i32_1 = arith.constant 0 : i32
    return %arg0, %c0_i32, %c0_i32_0 : i32, i32, i32
  }
  func.func @transform_1(%arg0: i32, %arg1: i32) -> (i32, i32) {
    %c0_i32 = arith.constant 0 : i32
    %c0_i32_0 = arith.constant 0 : i32
    %c0_i32_1 = arith.constant 0 : i32
    return %c0_i32, %c0_i32_0 : i32, i32
  }
  func.func @transform_2(%arg0: i32, %arg1: i32) -> (i32, i32) {
    %c0_i32 = arith.constant 0 : i32
    %c0_i32_0 = arith.constant 0 : i32
    %c0_i32_1 = arith.constant 0 : i32
    return %c0_i32, %c0_i32_0 : i32, i32
  }
  func.func @transform_3(%arg0: i32, %arg1: i32) -> (i32, i32, i32) {
    %c0_i32 = arith.constant 0 : i32
    %c0_i32_0 = arith.constant 0 : i32
    return %arg0, %c0_i32, %arg1 : i32, i32, i32
  }
}

</mosaic_0001>

<bundles_post_ra>
// kernel: conv0.1
= control target key start
LH: loop header
LB: loop body
LE: loop exit
PB: predicated region body
PF: predicated region fallthrough
CT: control target
= control target key end

     0   :  { %s1671_s12 = smov 0   ;;  %s1673_s13 = smov 0   ;;  %s2699_s0 = inlined_call_operand.vmem [shape: f32[2,1,5134], index: 0, kind: input, shape index: {}]   ;;  %s2700_s1 = inlined_call_operand.vmem [shape: f32[16,15], index: 1, kind: input, shape index: {}]   ;;  %s2701_s2 = inlined_call_operand.vmem [shape: f32[16,1], index: 2, kind: input, shape index: {}]   ;;  %s2702_s3 = inlined_call_operand.vmem [shape: bf16[2,16,5120], index: 3, kind: output, shape index: {}]  }
   0x1   :  { %s1675_s14 = smov 0   ;;  %s1677_s15 = smov 0  }
   0x2   :  { %s1679_s16 = smov 0   ;;  %s1681_s17 = smov 0  }
   0x3   :  { %s1683_s18 = smov 0  }
   0x4 LB: > { %s22_s19 = sadd.s32 1, %s1612_s16  ;;  %s25_s20 = sadd.s32 1, %s1616_s17  ;;  %s1620_s18 = sphi %s1683_s18, %s13_s18   ;;  %s1616_s17 = sphi %s1681_s17, %s2828_s17   ;;  %s1612_s16 = sphi %s1679_s16, %s2827_s16   ;;  %s1608_s15 = sphi %s1677_s15, %s2826_s15   ;;  %s1604_s14 = sphi %s1675_s14, %s2825_s14   ;;  %s1600_s13 = sphi %s1673_s13, %s2824_s13   ;;  %s1596_s12 = sphi %s1671_s12, %s2823_s12  }
   0x5   : > { %p23_p0 = scmp.ge.s32.totalorder %s22_s19, 10  ;;  %s1431_s21 = sadd.s32 4294967295, %s1620_s18  }
   0x6   : > { %p112_p1 = scmp.ne.s32.totalorder %s1600_s13, %s1596_s12  ;;  %p113_p2 = scmp.eq.s32.totalorder %s1431_s21, 19 }
   0x7   : > { %s2830_s19 = smov (%p23_p0, %s22_s19), 0  ;;  %s2832_s20 = smov (!%p23_p0, %s25_s20), %s1616_s17 }
   0x8   : > { %s98_s22 = ssub.s32 %s1612_s16, %s2830_s19  ;;  %p27_p3 = scmp.ge.s32.totalorder %s2832_s20, 2 }
   0x9   : > { %p1435_p4 = scmp.ge.s32.totalorder %s1620_s18, 1  ;;  %p1717_p5 = por %p113_p2, %p112_p1 }
   0xa   : > { %p150_p6 = scmp.lt.s32.totalorder %s1620_s18, 21  ;;  %s2834_s20 = smov (%p27_p3, %s2832_s20), 0 }
   0xb   : > { %s97_s24 = ssub.s32 %s1616_s17, %s2834_s20  ;;  %s102_s26 = sadd.s32 1, %s1600_s13 }
   0xc   : > { %p151_p7 = pnand %p1435_p4, %p150_p6  ;;  %s99_s25 = sor.u32 %s98_s22, %s97_s24 }
   0xd   : > { %p100_p8 = scmp.eq.s32.totalorder %s99_s25, 0 }
   0xe   : > { %154 = sbr.rel (%p151_p7) target bundleno = 1105 (0x451), region = 32 }
   0xf   : > { %s1728_s27 = scalar_select %p100_p8, %s1600_s13, %s102_s26  }
  0x15   : > { %v1733_v0 = vld [vmem:[%s2700_s1] sm:$0xff]  ;;  %v1622_v1 = vmov 1   ;;  %v1623_v2 = vmov 2   ;;  %v1740_v3 = vld [vmem:[%s2700_s1 + $0x8] sm:$0xff]  ;;  %v1624_v4 = vmov 3   ;;  %v1625_v5 = vmov 4  }
  0x16   : > { %1538 = vset.pattern.permute.xlu1 %v1622_v1  ;;  %1539 = vset.pattern.permute.xlu0 %v1623_v2  ;;  %v1626_v6 = vmov 5   ;;  %v1627_v7 = vmov 6   ;;  %p172_p9 = scmp.lt.s32.totalorder %s1608_s15, 1  ;;  %s1437_s7 = sshll.u32 %s1604_s14, 9  ;;  %v195_v8 = vlaneseq  ;;  %v1629_v23 = vmov 7  }
  0x17   : > { %232 = vperm.xlu1 %1538, %v1733_v0   ;;  %310 = vperm.xlu0 %1539, %v1733_v0   ;;  %s178_s11 = sshra.s32 %s1437_s7, 7  ;;  %s1628_s22 = smov 127   ;;  %vm722_vm0 = vcmask 990208   ;;  %vm795_vm1 = vcmask 982016   ;;  %vm868_vm2 = vcmask 973824   ;;  %vm284_vm3 = vcmask 1039360  }
  0x18   : > { %s173_s5 = scalar_select %p172_p9, %s1608_s15, 1  ;;  %v196_v9 = vshrl.u32 %v195_v8, 7  ;;  %vm357_vm4 = vcmask 1031168   ;;  %vm430_vm5 = vcmask 1022976   ;;  %vm503_vm6 = vcmask 1014784  }
  0x19   : > { %s1630_s24 = smov 126   ;;  %s1631_s25 = smov 125   ;;  %vm576_vm7 = vcmask 1006592   ;;  %vm649_vm8 = vcmask 998400   ;;  %vm941_vm9 = vcmask 965632   ;;  %vm1014_vm10 = vcmask 957440  }
  0x1a   : > { %s1451_s6 = smul.u32 41, %s173_s5  ;;  %v201_v10 = vsub.s32 1, %v196_v9  ;;  %v197_v11 = vsub.s32 0, %v196_v9  ;;  %v209_v15 = vsub.s32 3, %v196_v9  ;;  %v205_v16 = vsub.s32 2, %v196_v9  ;;  %s1632_s26 = smov 124  }
  0x1b   : > { %236 = vperm.xlu1 %1538, %v1740_v3   ;;  %1542 = vset.pattern.permute.xlu0 %v1624_v4  ;;  %v241_v18 = vsub.s32 4, %v196_v9  ;;  %s1633_s28 = smov 123   ;;  %s1634_s29 = smov 122   ;;  %vm1087_vm11 = vcmask 949248   ;;  %vm1160_vm12 = vcmask 941056   ;;  %vm1233_vm13 = vcmask 932864  }
  0x1c   : > { %387 = vperm.xlu0 %1542, %v1740_v3   ;;  %s175_s10 = scalar_lea.vmem %s2699_s0, %s1451_s6  ;;  %s1636_s30 = smov 121  }
  0x1d   : > { %s180_s21 = scalar_lea.vmem %s175_s10, %s178_s11  ;;  %s1638_s4 = smov 120  }
  0x1e   : > { %v181_v12 = vld [vmem:[%s180_s21] sm:$0x1f]  ;;  %s1640_s5 = smov 119   ;;  %s1646_s6 = smov 118  }
  0x1f   : > { %1540 = vset.pattern.permute.xlu1 %v1623_v2  ;;  %v1758_v13 = vrot.slane %v181_v12, %v201_v10  ;;  %v1760_v14 = vrot.slane %v181_v12, %v197_v11  ;;  %v1764_v21 = vrot.slane %v181_v12, %v209_v15  ;;  %v1766_v22 = vrot.slane %v181_v12, %v205_v16  ;;  %s1647_s7 = smov 117   ;;  %s1648_s8 = smov 116  }
  0x20   : > { %314 = vperm.xlu1 %1540, %v1740_v3   ;;  %1543 = vset.pattern.permute.xlu0 %v1625_v5  ;;  %v1770_v26 = vrot.slane %v181_v12, %v241_v18 }
  0x21   : > { %456 = vperm.xlu0 %1543, %v1733_v0  }
  0x24   : > { %1541 = vset.pattern.permute.xlu1 %v1624_v4 }
  0x25   : > { %383 = vperm.xlu1 %1541, %v1733_v0   ;;  %1546 = vset.pattern.permute.xlu0 %v1626_v6 }
  0x26   : > { %533 = vperm.xlu0 %1546, %v1740_v3  }
  0x29   : > { %1544 = vset.pattern.permute.xlu1 %v1625_v5 }
  0x2a   : > { %460 = vperm.xlu1 %1544, %v1740_v3   ;;  %1547 = vset.pattern.permute.xlu0 %v1627_v7 }
  0x2b   : > { %602 = vperm.xlu0 %1547, %v1733_v0  }
  0x2e   : > { %1545 = vset.pattern.permute.xlu1 %v1626_v6 }
  0x2f   : > { %529 = vperm.xlu1 %1545, %v1733_v0   ;;  %1550 = vset.pattern.permute.xlu0 %v1629_v23 }
  0x33   : > { %1548 = vset.pattern.permute.xlu1 %v1627_v7 }
  0x34   : > { %606 = vperm.xlu1 %1548, %v1740_v3  }
  0x38   : > { %1549 = vset.pattern.permute.xlu1 %v1629_v23 }
  0x96   : > { %v233_v17 = vpop.permute.xlu1 %232  ;;  %v311_v32 = vpop.permute.xlu0 %310 }
  0x97   : > { %v245_v19 = vmul.f32 %v233_v17, %v1758_v13  ;;  %v244_v20 = vmul.f32 %v233_v17, %v1760_v14  ;;  %v247_v24 = vmul.f32 %v233_v17, %v1764_v21  ;;  %v246_v25 = vmul.f32 %v233_v17, %v1766_v22 }
  0x98   : > { %v248_v29 = vmul.f32 %v1770_v26, %v233_v17  ;;  %v317_v35 = vmul.f32 %v311_v32, %v1760_v14  ;;  %v318_v36 = vmul.f32 %v311_v32, %v1758_v13  ;;  %v319_v38 = vmul.f32 %v311_v32, %v1766_v22 }
  0x99   : > { %266 = vrot.lane.b32.xlu1 %v245_v19, %s1628_s22  ;;  %264 = vrot.lane.b32.xlu0 %v244_v20, %s1628_s22  ;;  %v320_v39 = vmul.f32 %v311_v32, %v1764_v21  ;;  %v321_v41 = vmul.f32 %v311_v32, %v1770_v26 }
  0x9a   : > { %v237_v27 = vpop.permute.xlu1 %236 }
  0x9b   : > { %v249_v28 = vmul.f32 %v237_v27, %v1760_v14  ;;  %v251_v30 = vmul.f32 %v237_v27, %v1766_v22  ;;  %v250_v31 = vmul.f32 %v237_v27, %v1758_v13  ;;  %v253_v33 = vmul.f32 %v1770_v26, %v237_v27  ;;  %v388_v49 = vpop.permute.xlu0 %387 }
  0x9c   : > { %v252_v34 = vmul.f32 %v237_v27, %v1764_v21  ;;  %v396_v52 = vmul.f32 %v388_v49, %v1758_v13  ;;  %v395_v54 = vmul.f32 %v388_v49, %v1760_v14  ;;  %v398_v55 = vmul.f32 %v388_v49, %v1764_v21 }
  0x9d   : > { %270 = vrot.lane.b32.xlu1 %v247_v24, %s1628_s22  ;;  %268 = vrot.lane.b32.xlu0 %v246_v25, %s1628_s22  ;;  %v397_v58 = vmul.f32 %v388_v49, %v1766_v22  ;;  %v399_v61 = vmul.f32 %v388_v49, %v1770_v26 }
  0x9f   : > { %v315_v37 = vpop.permute.xlu1 %314 }
  0xa0   : > { %v322_v40 = vmul.f32 %v315_v37, %v1760_v14  ;;  %v323_v42 = vmul.f32 %v315_v37, %v1758_v13  ;;  %v324_v43 = vmul.f32 %v315_v37, %v1766_v22  ;;  %v325_v45 = vmul.f32 %v315_v37, %v1764_v21  ;;  %v457_v56 = vpop.permute.xlu0 %456 }
  0xa1   : > { %274 = vrot.lane.b32.xlu1 %v249_v28, %s1628_s22  ;;  %272 = vrot.lane.b32.xlu0 %v248_v29, %s1628_s22  ;;  %v326_v46 = vmul.f32 %v315_v37, %v1770_v26  ;;  %v464_v57 = vmul.f32 %v457_v56, %v1758_v13  ;;  %v466_v59 = vmul.f32 %v457_v56, %v1764_v21 }
  0xa2   : > { %v463_v62 = vmul.f32 %v457_v56, %v1760_v14  ;;  %v465_v2 = vmul.f32 %v457_v56, %v1766_v22  ;;  %v467_v6 = vmul.f32 %v457_v56, %v1770_v26 }
  0xa4   : > { %v384_v44 = vpop.permute.xlu1 %383 }
  0xa5   : > { %278 = vrot.lane.b32.xlu1 %v251_v30, %s1628_s22  ;;  %276 = vrot.lane.b32.xlu0 %v250_v31, %s1628_s22  ;;  %v390_v47 = vmul.f32 %v384_v44, %v1760_v14  ;;  %v392_v48 = vmul.f32 %v384_v44, %v1766_v22  ;;  %v391_v50 = vmul.f32 %v384_v44, %v1758_v13  ;;  %v534_v10 = vpop.permute.xlu0 %533 }
  0xa6   : > { %v394_v51 = vmul.f32 %v384_v44, %v1770_v26  ;;  %v393_v53 = vmul.f32 %v384_v44, %v1764_v21  ;;  %v542_v15 = vmul.f32 %v534_v10, %v1758_v13  ;;  %v544_v16 = vmul.f32 %v534_v10, %v1764_v21 }
  0xa7   : > { %v541_v23 = vmul.f32 %v534_v10, %v1760_v14  ;;  %v543_v28 = vmul.f32 %v534_v10, %v1766_v22  ;;  %v545_v30 = vmul.f32 %v534_v10, %v1770_v26 }
  0xa9   : > { %282 = vrot.lane.b32.xlu1 %v253_v33, %s1628_s22  ;;  %280 = vrot.lane.b32.xlu0 %v252_v34, %s1628_s22  ;;  %v461_v60 = vpop.permute.xlu1 %460  ;;  %s1649_s22 = smov 115  }
  0xaa   : > { %v468_v63 = vmul.f32 %v461_v60, %v1760_v14  ;;  %v470_v1 = vmul.f32 %v461_v60, %v1766_v22  ;;  %v472_v4 = vmul.f32 %v461_v60, %v1770_v26  ;;  %v469_v7 = vmul.f32 %v461_v60, %v1758_v13  ;;  %v603_v17 = vpop.permute.xlu0 %602 }
  0xab   : > { %v471_v11 = vmul.f32 %v461_v60, %v1764_v21  ;;  %v610_v19 = vmul.f32 %v603_v17, %v1758_v13  ;;  %v612_v24 = vmul.f32 %v603_v17, %v1764_v21  ;;  %v609_v31 = vmul.f32 %v603_v17, %v1760_v14 }
  0xac   : > { %v611_v33 = vmul.f32 %v603_v17, %v1766_v22 }
  0xad   : > { %337 = vrot.lane.b32.xlu1 %v317_v35, %s1630_s24  ;;  %339 = vrot.lane.b32.xlu0 %v318_v36, %s1630_s24  ;;  %v613_v36 = vmul.f32 %v603_v17, %v1770_v26 }
  0xae   : > { %v530_v5 = vpop.permute.xlu1 %529 }
  0xaf   : > { %v538_v8 = vmul.f32 %v530_v5, %v1766_v22  ;;  %v540_v9 = vmul.f32 %v530_v5, %v1770_v26  ;;  %v536_v12 = vmul.f32 %v530_v5, %v1760_v14  ;;  %v537_v18 = vmul.f32 %v530_v5, %v1758_v13 }
  0xb0   : > { %v539_v20 = vmul.f32 %v530_v5, %v1764_v21 }
  0xb1   : > { %341 = vrot.lane.b32.xlu1 %v319_v38, %s1630_s24  ;;  %343 = vrot.lane.b32.xlu0 %v320_v39, %s1630_s24 }
  0xb3   : > { %v607_v25 = vpop.permute.xlu1 %606 }
  0xb4   : > { %v614_v27 = vmul.f32 %v607_v25, %v1760_v14  ;;  %v616_v29 = vmul.f32 %v607_v25, %v1766_v22  ;;  %v618_v32 = vmul.f32 %v607_v25, %v1770_v26  ;;  %v615_v37 = vmul.f32 %v607_v25, %v1758_v13 }
  0xb5   : > { %345 = vrot.lane.b32.xlu1 %v321_v41, %s1630_s24  ;;  %347 = vrot.lane.b32.xlu0 %v322_v40, %s1630_s24 }
  0xb9   : > { %349 = vrot.lane.b32.xlu1 %v323_v42, %s1630_s24  ;;  %351 = vrot.lane.b32.xlu0 %v324_v43, %s1630_s24  ;;  %v617_v42 = vmul.f32 %v607_v25, %v1764_v21 }
  0xbd   : > { %353 = vrot.lane.b32.xlu1 %v325_v45, %s1630_s24  ;;  %355 = vrot.lane.b32.xlu0 %v326_v46, %s1630_s24  ;;  %s1650_s24 = smov 114  }
  0xc1   : > { %410 = vrot.lane.b32.xlu1 %v390_v47, %s1631_s25  ;;  %414 = vrot.lane.b32.xlu0 %v392_v48, %s1631_s25 }
  0xc5   : > { %412 = vrot.lane.b32.xlu1 %v391_v50, %s1631_s25  ;;  %418 = vrot.lane.b32.xlu0 %v394_v51, %s1631_s25 }
  0xc9   : > { %416 = vrot.lane.b32.xlu1 %v393_v53, %s1631_s25  ;;  %422 = vrot.lane.b32.xlu0 %v396_v52, %s1631_s25  ;;  %v1635_v53 = vmov 8  }
  0xcd   : > { %420 = vrot.lane.b32.xlu1 %v395_v54, %s1631_s25  ;;  %426 = vrot.lane.b32.xlu0 %v398_v55, %s1631_s25 }
  0xd1   : > { %424 = vrot.lane.b32.xlu1 %v397_v58, %s1631_s25  ;;  %485 = vrot.lane.b32.xlu0 %v464_v57, %s1632_s26 }
  0xd5   : > { %428 = vrot.lane.b32.xlu1 %v399_v61, %s1631_s25  ;;  %489 = vrot.lane.b32.xlu0 %v466_v59, %s1632_s26  ;;  %s169_s25 = sand.u32 1, %s1596_s12  }
  0xd6   : > { %s1436_s12 = sshll.u32 %s169_s25, 5 }
  0xd9   : > { %483 = vrot.lane.b32.xlu1 %v463_v62, %s1632_s26  ;;  %493 = vrot.lane.b32.xlu0 %v468_v63, %s1632_s26 }
  0xdd   : > { %487 = vrot.lane.b32.xlu1 %v465_v2, %s1632_s26  ;;  %497 = vrot.lane.b32.xlu0 %v470_v1, %s1632_s26 }
  0xe1   : > { %491 = vrot.lane.b32.xlu1 %v467_v6, %s1632_s26  ;;  %501 = vrot.lane.b32.xlu0 %v472_v4, %s1632_s26 }
  0xe5   : > { %495 = vrot.lane.b32.xlu1 %v469_v7, %s1632_s26  ;;  %560 = vrot.lane.b32.xlu0 %v538_v8, %s1633_s28 }
  0xe9   : > { %499 = vrot.lane.b32.xlu1 %v471_v11, %s1632_s26  ;;  %564 = vrot.lane.b32.xlu0 %v540_v9, %s1633_s28  ;;  %s2655_s26 = scalar_lea.vmem [#allocation2], %s1436_s12 }
  0xed   : > { %556 = vrot.lane.b32.xlu1 %v536_v12, %s1633_s28  ;;  %568 = vrot.lane.b32.xlu0 %v542_v15, %s1633_s28 }
  0xf1   : > { %558 = vrot.lane.b32.xlu1 %v537_v18, %s1633_s28  ;;  %572 = vrot.lane.b32.xlu0 %v544_v16, %s1633_s28 }
  0xf5   : > { %562 = vrot.lane.b32.xlu1 %v539_v20, %s1633_s28  ;;  %631 = vrot.lane.b32.xlu0 %v610_v19, %s1634_s29 }
  0xf9   : > { %566 = vrot.lane.b32.xlu1 %v541_v23, %s1633_s28  ;;  %635 = vrot.lane.b32.xlu0 %v612_v24, %s1634_s29 }
  0xfd   : > { %570 = vrot.lane.b32.xlu1 %v543_v28, %s1633_s28  ;;  %639 = vrot.lane.b32.xlu0 %v614_v27, %s1634_s29 }
 0x101   : > { %574 = vrot.lane.b32.xlu1 %v545_v30, %s1633_s28  ;;  %643 = vrot.lane.b32.xlu0 %v616_v29, %s1634_s29  ;;  %s1443_s28 = sshll.u32 (%p1717_p5), %s1604_s14, 2 }
 0x105   : > { %629 = vrot.lane.b32.xlu1 %v609_v31, %s1634_s29  ;;  %647 = vrot.lane.b32.xlu0 %v618_v32, %s1634_s29 }
 0x109   : > { %633 = vrot.lane.b32.xlu1 %v611_v33, %s1634_s29  ;;  %679 = vperm.xlu0 %1550, %v1740_v3  }
 0x10b   : > { %v1843_v34 = vpop.permute.xlu1 %266  ;;  %v1845_v35 = vpop.permute.xlu0 %264 }
 0x10d   : > { %637 = vrot.lane.b32.xlu1 %v613_v36, %s1634_s29  ;;  %1551 = vset.pattern.permute.xlu0 %v1635_v53 }
 0x10f   : > { %v1850_v38 = vpop.permute.xlu1 %270  ;;  %v1852_v39 = vpop.permute.xlu0 %268 }
 0x111   : > { %641 = vrot.lane.b32.xlu1 %v615_v37, %s1634_s29 }
 0x113   : > { %v1855_v40 = vpop.permute.xlu1 %274  ;;  %v1857_v41 = vpop.permute.xlu0 %272 }
 0x115   : > { %645 = vrot.lane.b32.xlu1 %v617_v42, %s1634_s29  ;;  %s1452_s29 = smul.u32 (%p1717_p5), 80, %s1608_s15 }
 0x117   : > { %v1861_v43 = vpop.permute.xlu1 %278  ;;  %v1863_v44 = vpop.permute.xlu0 %276 }
 0x119   : > { %675 = vperm.xlu1 %1549, %v1733_v0  }
 0x11b   : > { %v1866_v45 = vpop.permute.xlu1 %282  ;;  %v1868_v46 = vpop.permute.xlu0 %280 }
 0x11d   : > { %1552 = vset.pattern.permute.xlu1 %v1635_v53 }
 0x11f   : > { %v1870_v47 = vpop.permute.xlu1 %337  ;;  %v1872_v48 = vpop.permute.xlu0 %339 }
 0x123   : > { %v1874_v49 = vpop.permute.xlu1 %341  ;;  %v1876_v50 = vpop.permute.xlu0 %343 }
 0x127   : > { %v1878_v51 = vpop.permute.xlu1 %345  ;;  %v1880_v52 = vpop.permute.xlu0 %347 }
 0x12b   : > { %v1882_v54 = vpop.permute.xlu1 %349  ;;  %v1884_v55 = vpop.permute.xlu0 %351 }
 0x12f   : > { %v1886_v56 = vpop.permute.xlu1 %353  ;;  %v1888_v57 = vpop.permute.xlu0 %355 }
 0x133   : > { %v1890_v58 = vpop.permute.xlu1 %410  ;;  %v1894_v60 = vpop.permute.xlu0 %414 }
 0x137   : > { %v1892_v59 = vpop.permute.xlu1 %412  ;;  %v1898_v62 = vpop.permute.xlu0 %418 }
 0x13b   : > { %v1896_v61 = vpop.permute.xlu1 %416  ;;  %v1904_v2 = vpop.permute.xlu0 %422 }
 0x13f   : > { %v1900_v63 = vpop.permute.xlu1 %420  ;;  %v1908_v5 = vpop.permute.xlu0 %426 }
 0x143   : > { %v1902_v1 = vpop.permute.xlu1 %424  ;;  %v1912_v7 = vpop.permute.xlu0 %485 }
 0x147   : > { %v1906_v4 = vpop.permute.xlu1 %428  ;;  %v1918_v10 = vpop.permute.xlu0 %489 }
 0x14b   : > { %v1910_v6 = vpop.permute.xlu1 %483  ;;  %v1922_v12 = vpop.permute.xlu0 %493 }
 0x14f   : > { %v1914_v8 = vpop.permute.xlu1 %487  ;;  %v1928_v17 = vpop.permute.xlu0 %497 }
 0x153   : > { %v1916_v9 = vpop.permute.xlu1 %491  ;;  %v1932_v19 = vpop.permute.xlu0 %501 }
 0x157   : > { %v1920_v11 = vpop.permute.xlu1 %495  ;;  %v1938_v24 = vpop.permute.xlu0 %560 }
 0x15b   : > { %v1924_v15 = vpop.permute.xlu1 %499  ;;  %v1942_v27 = vpop.permute.xlu0 %564 }
 0x15c   : > { %2722 = vst [vmem:[#allocation6_spill] sm:$0xff] %v1942_v27 }
 0x15f   : > { %v1926_v16 = vpop.permute.xlu1 %556  ;;  %v1944_v28 = vpop.permute.xlu0 %568 }
 0x160   : > { %2723 = vst [vmem:[#allocation7_spill] sm:$0xff] %v1944_v28 }
 0x163   : > { %v1930_v18 = vpop.permute.xlu1 %558  ;;  %v1948_v30 = vpop.permute.xlu0 %572 }
 0x164   : > { %2725 = vst [vmem:[#allocation9_spill] sm:$0xff] %v1948_v30 }
 0x167   : > { %v1934_v20 = vpop.permute.xlu1 %562  ;;  %v1952_v32 = vpop.permute.xlu0 %631 }
 0x168   : > { %2719 = vst [vmem:[#allocation3_spill] sm:$0xff] %v1934_v20  ;;  %2727 = vst [vmem:[#allocation11_spill] sm:$0xff] %v1952_v32 }
 0x16b   : > { %v1936_v23 = vpop.permute.xlu1 %566  ;;  %v1956_v36 = vpop.permute.xlu0 %635 }
 0x16c   : > { %2720 = vst [vmem:[#allocation4_spill] sm:$0xff] %v1936_v23  ;;  %2729 = vst [vmem:[#allocation13_spill] sm:$0xff] %v1956_v36 }
 0x16f   : > { %v1940_v25 = vpop.permute.xlu1 %570  ;;  %v1960_v42 = vpop.permute.xlu0 %639 }
 0x170   : > { %2721 = vst [vmem:[#allocation5_spill] sm:$0xff] %v1940_v25  ;;  %2731 = vst [vmem:[#allocation15_spill] sm:$0xff] %v1960_v42 }
 0x173   : > { %v1946_v29 = vpop.permute.xlu1 %574  ;;  %v1964_v25 = vpop.permute.xlu0 %643 }
 0x174   : > { %2724 = vst [vmem:[#allocation8_spill] sm:$0xff] %v1946_v29  ;;  %2733 = vst [vmem:[#allocation17_spill] sm:$0xff] %v1964_v25 }
 0x177   : > { %v1950_v31 = vpop.permute.xlu1 %629  ;;  %v1968_v29 = vpop.permute.xlu0 %647 }
 0x178   : > { %2726 = vst [vmem:[#allocation10_spill] sm:$0xff] %v1950_v31  ;;  %2735 = vst [vmem:[#allocation19_spill] sm:$0xff] %v1968_v29 }
 0x17b   : > { %v1954_v33 = vpop.permute.xlu1 %633 }
 0x17c   : > { %2728 = vst [vmem:[#allocation12_spill] sm:$0xff] %v1954_v33 }
 0x17f   : > { %v1958_v37 = vpop.permute.xlu1 %637 }
 0x180   : > { %2730 = vst [vmem:[#allocation14_spill] sm:$0xff] %v1958_v37 }
 0x183   : > { %v1962_v53 = vpop.permute.xlu1 %641 }
 0x184   : > { %2732 = vst [vmem:[#allocation16_spill] sm:$0xff] %v1962_v53 }
 0x187   : > { %v1966_v23 = vpop.permute.xlu1 %645 }
 0x188   : > { %2734 = vst [vmem:[#allocation18_spill] sm:$0xff] %v1966_v23  ;;  %v680_v36 = vpop.permute.xlu0 %679 }
 0x189   : > { %v688_v25 = vmul.f32 %v680_v36, %v1758_v13  ;;  %v690_v29 = vmul.f32 %v680_v36, %v1764_v21  ;;  %v687_v53 = vmul.f32 %v680_v36, %v1760_v14 }
 0x198   : > { %v676_v30 = vpop.permute.xlu1 %675 }
 0x199   : > { %v682_v31 = vmul.f32 %v676_v30, %v1760_v14  ;;  %v684_v32 = vmul.f32 %v676_v30, %v1766_v22  ;;  %v683_v37 = vmul.f32 %v676_v30, %v1758_v13  ;;  %v686_v42 = vmul.f32 %v676_v30, %v1770_v26 }
 0x19a   : > { %v685_v23 = vmul.f32 %v676_v30, %v1764_v21 }
 0x19b   : > { %702 = vrot.lane.b32.xlu1 %v682_v31, %s1636_s30  ;;  %706 = vrot.lane.b32.xlu0 %v684_v32, %s1636_s30  ;;  %v689_v31 = vmul.f32 %v680_v36, %v1766_v22  ;;  %v691_v32 = vmul.f32 %v680_v36, %v1770_v26 }
 0x19f   : > { %704 = vrot.lane.b32.xlu1 %v683_v37, %s1636_s30  ;;  %710 = vrot.lane.b32.xlu0 %v686_v42, %s1636_s30  ;;  %v1637_v37 = vmov 9  }
 0x1a3   : > { %708 = vrot.lane.b32.xlu1 %v685_v23, %s1636_s30  ;;  %714 = vrot.lane.b32.xlu0 %v688_v25, %s1636_s30 }
 0x1a7   : > { %718 = vrot.lane.b32.xlu0 %v690_v29, %s1636_s30  ;;  %712 = vrot.lane.b32.xlu1 %v687_v53, %s1636_s30 }
 0x1ab   : > { %748 = vperm.xlu0 %1551, %v1733_v0   ;;  %716 = vrot.lane.b32.xlu1 %v689_v31, %s1636_s30 }
 0x1af   : > { %720 = vrot.lane.b32.xlu1 %v691_v32, %s1636_s30  ;;  %1554 = vset.pattern.permute.xlu0 %v1637_v37  ;;  %s1339_s30 = sadd.s32 (%p1717_p5), %s1452_s29, %s1443_s28 }
 0x1b3   : > { %752 = vperm.xlu1 %1552, %v1740_v3  }
 0x1b7   : > { %1553 = vset.pattern.permute.xlu1 %v1637_v37 }
 0x20d   : > { %v1982_v23 = vpop.permute.xlu1 %702  ;;  %v1984_v25 = vpop.permute.xlu0 %706 }
 0x20e   : > { %2736 = vst [vmem:[#allocation20_spill] sm:$0xff] %v1982_v23  ;;  %2737 = vst [vmem:[#allocation21_spill] sm:$0xff] %v1984_v25 }
 0x211   : > { %v1986_v30 = vpop.permute.xlu1 %704  ;;  %v1988_v29 = vpop.permute.xlu0 %710 }
 0x212   : > { %2738 = vst [vmem:[#allocation22_spill] sm:$0xff] %v1986_v30  ;;  %2739 = vst [vmem:[#allocation23_spill] sm:$0xff] %v1988_v29 }
 0x215   : > { %v1990_v42 = vpop.permute.xlu1 %708  ;;  %v715_v53 = vpop.permute.xlu0 %714 }
 0x216   : > { %2740 = vst [vmem:[#allocation24_spill] sm:$0xff] %v1990_v42 }
 0x219   : > { %v713_v31 = vpop.permute.xlu1 %712  ;;  %v719_v32 = vpop.permute.xlu0 %718 }
 0x21a   : > { %v1993_v36 = vsel %vm722_vm0, %v713_v31, %v715_v53 }
 0x21b   : > { %2741 = vst [vmem:[#allocation25_spill] sm:$0xff] %v1993_v36 }
 0x21d   : > { %v717_v33 = vpop.permute.xlu1 %716 }
 0x21e   : > { %v1996_v37 = vsel %vm722_vm0, %v715_v53, %v717_v33  ;;  %v1999_v23 = vsel %vm722_vm0, %v717_v33, %v719_v32 }
 0x21f   : > { %2742 = vst [vmem:[#allocation26_spill] sm:$0xff] %v1996_v37  ;;  %2743 = vst [vmem:[#allocation27_spill] sm:$0xff] %v1999_v23 }
 0x221   : > { %v721_v25 = vpop.permute.xlu1 %720 }
 0x222   : > { %v2002_v30 = vsel %vm722_vm0, %v719_v32, %v721_v25 }
 0x223   : > { %2744 = vst [vmem:[#allocation28_spill] sm:$0xff] %v2002_v30 }
 0x22a   : > { %v749_v29 = vpop.permute.xlu0 %748 }
 0x22b   : > { %v756_v42 = vmul.f32 %v749_v29, %v1758_v13  ;;  %v755_v28 = vmul.f32 %v749_v29, %v1760_v14  ;;  %v758_v31 = vmul.f32 %v749_v29, %v1764_v21  ;;  %v757_v53 = vmul.f32 %v749_v29, %v1766_v22 }
 0x22c   : > { %v759_v25 = vmul.f32 %v749_v29, %v1770_v26 }
 0x22d   : > { %777 = vrot.lane.b32.xlu0 %v756_v42, %s1638_s4  ;;  %775 = vrot.lane.b32.xlu1 %v755_v28, %s1638_s4 }
 0x231   : > { %781 = vrot.lane.b32.xlu0 %v758_v31, %s1638_s4  ;;  %779 = vrot.lane.b32.xlu1 %v757_v53, %s1638_s4  ;;  %v1639_v31 = vmov 10  }
 0x232   : > { %v753_v33 = vpop.permute.xlu1 %752 }
 0x233   : > { %v760_v23 = vmul.f32 %v753_v33, %v1760_v14  ;;  %v762_v32 = vmul.f32 %v753_v33, %v1766_v22  ;;  %v761_v30 = vmul.f32 %v753_v33, %v1758_v13  ;;  %v764_v28 = vmul.f32 %v753_v33, %v1770_v26 }
 0x234   : > { %v763_v42 = vmul.f32 %v753_v33, %v1764_v21 }
 0x235   : > { %785 = vrot.lane.b32.xlu0 %v760_v23, %s1638_s4  ;;  %783 = vrot.lane.b32.xlu1 %v759_v25, %s1638_s4 }
 0x239   : > { %789 = vrot.lane.b32.xlu0 %v762_v32, %s1638_s4  ;;  %787 = vrot.lane.b32.xlu1 %v761_v30, %s1638_s4 }
 0x23d   : > { %793 = vrot.lane.b32.xlu0 %v764_v28, %s1638_s4  ;;  %791 = vrot.lane.b32.xlu1 %v763_v42, %s1638_s4  ;;  %s1444_s4 = sshll.u32 (%p1717_p5), %s1339_s30, 2 }
 0x241   : > { %821 = vperm.xlu1 %1553, %v1733_v0   ;;  %825 = vperm.xlu0 %1554, %v1740_v3  }
 0x245   : > { %1555 = vset.pattern.permute.xlu0 %v1639_v31  ;;  %1556 = vset.pattern.permute.xlu1 %v1639_v31 }
 0x29f   : > { %v778_v23 = vpop.permute.xlu0 %777  ;;  %v776_v29 = vpop.permute.xlu1 %775 }
 0x2a0   : > { %v2017_v53 = vsel %vm795_vm1, %v776_v29, %v778_v23 }
 0x2a1   : > { %2745 = vst [vmem:[#allocation29_spill] sm:$0xff] %v2017_v53 }
 0x2a3   : > { %v782_v30 = vpop.permute.xlu0 %781  ;;  %v780_v25 = vpop.permute.xlu1 %779 }
 0x2a4   : > { %v2020_v32 = vsel %vm795_vm1, %v778_v23, %v780_v25  ;;  %v2023_v33 = vsel %vm795_vm1, %v780_v25, %v782_v30 }
 0x2a5   : > { %2746 = vst [vmem:[#allocation30_spill] sm:$0xff] %v2020_v32  ;;  %2747 = vst [vmem:[#allocation31_spill] sm:$0xff] %v2023_v33 }
 0x2a7   : > { %v786_v28 = vpop.permute.xlu0 %785  ;;  %v784_v42 = vpop.permute.xlu1 %783 }
 0x2a8   : > { %v2026_v37 = vsel %vm795_vm1, %v782_v30, %v784_v42 }
 0x2a9   : > { %2748 = vst [vmem:[#allocation32_spill] sm:$0xff] %v2026_v37 }
 0x2ab   : > { %v790_v31 = vpop.permute.xlu0 %789  ;;  %v788_v36 = vpop.permute.xlu1 %787 }
 0x2ac   : > { %v2029_v27 = vsel %vm795_vm1, %v786_v28, %v788_v36  ;;  %v2032_v29 = vsel %vm795_vm1, %v788_v36, %v790_v31 }
 0x2ad   : > { %2749 = vst [vmem:[#allocation33_spill] sm:$0xff] %v2029_v27  ;;  %2750 = vst [vmem:[#allocation34_spill] sm:$0xff] %v2032_v29 }
 0x2af   : > { %v794_v53 = vpop.permute.xlu0 %793  ;;  %v792_v20 = vpop.permute.xlu1 %791 }
 0x2b0   : > { %v2035_v23 = vsel %vm795_vm1, %v790_v31, %v792_v20  ;;  %v2038_v25 = vsel %vm795_vm1, %v792_v20, %v794_v53 }
 0x2b1   : > { %2751 = vst [vmem:[#allocation35_spill] sm:$0xff] %v2035_v23  ;;  %2752 = vst [vmem:[#allocation36_spill] sm:$0xff] %v2038_v25 }
 0x2c0   : > { %v822_v33 = vpop.permute.xlu1 %821  ;;  %v826_v28 = vpop.permute.xlu0 %825 }
 0x2c1   : > { %v830_v30 = vmul.f32 %v822_v33, %v1766_v22  ;;  %v828_v42 = vmul.f32 %v822_v33, %v1760_v14  ;;  %v832_v36 = vmul.f32 %v822_v33, %v1770_v26  ;;  %v829_v29 = vmul.f32 %v822_v33, %v1758_v13 }
 0x2c2   : > { %v834_v31 = vmul.f32 %v826_v28, %v1758_v13  ;;  %v831_v20 = vmul.f32 %v822_v33, %v1764_v21  ;;  %v836_v53 = vmul.f32 %v826_v28, %v1764_v21  ;;  %v833_v25 = vmul.f32 %v826_v28, %v1760_v14 }
 0x2c3   : > { %852 = vrot.lane.b32.xlu0 %v830_v30, %s1640_s5  ;;  %848 = vrot.lane.b32.xlu1 %v828_v42, %s1640_s5  ;;  %v835_v30 = vmul.f32 %v826_v28, %v1766_v22  ;;  %v837_v42 = vmul.f32 %v826_v28, %v1770_v26  ;;  %v1642_v33 = vmov 13   ;;  %v1645_v28 = vmov 0  }
 0x2c7   : > { %856 = vrot.lane.b32.xlu0 %v832_v36, %s1640_s5  ;;  %850 = vrot.lane.b32.xlu1 %v829_v29, %s1640_s5  ;;  %v1641_v29 = vmov 11   ;;  %v1644_v36 = vmov 12  }
 0x2cb   : > { %860 = vrot.lane.b32.xlu0 %v834_v31, %s1640_s5  ;;  %854 = vrot.lane.b32.xlu1 %v831_v20, %s1640_s5 }
 0x2cf   : > { %864 = vrot.lane.b32.xlu0 %v836_v53, %s1640_s5  ;;  %858 = vrot.lane.b32.xlu1 %v833_v25, %s1640_s5  ;;  %v1643_v25 = vmov 14  }
 0x2d3   : > { %894 = vperm.xlu0 %1555, %v1733_v0   ;;  %862 = vrot.lane.b32.xlu1 %v835_v30, %s1640_s5 }
 0x2d7   : > { %1558 = vset.pattern.permute.xlu0 %v1641_v29  ;;  %866 = vrot.lane.b32.xlu1 %v837_v42, %s1640_s5 }
 0x2d8   : > { %971 = vperm.xlu0 %1558, %v1740_v3  }
 0x2db   : > { %898 = vperm.xlu1 %1556, %v1740_v3  }
 0x2dc   : > { %1560 = vset.pattern.permute.xlu0 %v1642_v33 }
 0x2dd   : > { %1113 = vperm.xlu0 %1560, %v1733_v0  }
 0x2df   : > { %1557 = vset.pattern.permute.xlu1 %v1641_v29 }
 0x2e0   : > { %967 = vperm.xlu1 %1557, %v1733_v0  }
 0x2e1   : > { %1563 = vset.pattern.permute.xlu0 %v1643_v25 }
 0x2e2   : > { %1190 = vperm.xlu0 %1563, %v1740_v3  }
 0x2e4   : > { %1559 = vset.pattern.permute.xlu1 %v1644_v36 }
 0x2e5   : > { %1040 = vperm.xlu1 %1559, %v1733_v0  }
 0x2e6   : > { %1564 = vset.pattern.permute.xlu0 %v1645_v28 }
 0x2e7   : > { %186 = vperm.xlu0 %1564, %v1733_v0  }
 0x2e9   : > { %1044 = vperm.xlu1 %1559, %v1740_v3  }
 0x2eb   : > { %191 = vperm.xlu0 %1564, %v1740_v3  }
 0x2ed   : > { %1561 = vset.pattern.permute.xlu1 %v1642_v33 }
 0x2ee   : > { %1117 = vperm.xlu1 %1561, %v1740_v3  }
 0x2f2   : > { %1562 = vset.pattern.permute.xlu1 %v1643_v25 }
 0x2f3   : > { %1186 = vperm.xlu1 %1562, %v1733_v0  }
 0x2f7   : > { %1565 = vset.pattern.permute.xlu1 %v1645_v28 }
 0x335   : > { %v853_v31 = vpop.permute.xlu0 %852  ;;  %v849_v20 = vpop.permute.xlu1 %848 }
 0x339   : > { %v857_v53 = vpop.permute.xlu0 %856  ;;  %v851_v30 = vpop.permute.xlu1 %850 }
 0x33a   : > { %v2063_v42 = vsel %vm868_vm2, %v849_v20, %v851_v30  ;;  %v2066_v29 = vsel %vm868_vm2, %v851_v30, %v853_v31 }
 0x33b   : > { %2753 = vst [vmem:[#allocation37_spill] sm:$0xff] %v2063_v42  ;;  %2754 = vst [vmem:[#allocation38_spill] sm:$0xff] %v2066_v29 }
 0x33d   : > { %v855_v36 = vpop.permute.xlu1 %854  ;;  %v861_v0 = vpop.permute.xlu0 %860 }
 0x33e   : > { %v2069_v33 = vsel %vm868_vm2, %v853_v31, %v855_v36  ;;  %v2072_v3 = vsel %vm868_vm2, %v855_v36, %v857_v53 }
 0x33f   : > { %2755 = vst [vmem:[#allocation39_spill] sm:$0xff] %v2069_v33  ;;  %2756 = vst [vmem:[#allocation40_spill] sm:$0xff] %v2072_v3 }
 0x341   : > { %v859_v25 = vpop.permute.xlu1 %858  ;;  %v865_v23 = vpop.permute.xlu0 %864 }
 0x342   : > { %v2075_v28 = vsel %vm868_vm2, %v859_v25, %v861_v0 }
 0x343   : > { %2757 = vst [vmem:[#allocation41_spill] sm:$0xff] %v2075_v28  ;;  %v2780_v28 = vld [vmem:[#allocation15_spill] sm:$0xff] }
 0x345   : > { %v863_v27 = vpop.permute.xlu1 %862 }
 0x346   : > { %v2078_v20 = vsel %vm868_vm2, %v861_v0, %v863_v27  ;;  %v2081_v30 = vsel %vm868_vm2, %v863_v27, %v865_v23 }
 0x347   : > { %2758 = vst [vmem:[#allocation42_spill] sm:$0xff] %v2078_v20  ;;  %2759 = vst [vmem:[#allocation43_spill] sm:$0xff] %v2081_v30  ;;  %v2773_v30 = vld [vmem:[#allocation12_spill] sm:$0xff]  ;;  %v2775_v20 = vld [vmem:[#allocation13_spill] sm:$0xff] }
 0x349   : > { %v867_v29 = vpop.permute.xlu1 %866 }
 0x34a   : > { %v2084_v31 = vsel %vm868_vm2, %v865_v23, %v867_v29  ;;  %v2097_v23 = vsel %vm284_vm3, %v1845_v35, %v1843_v34  ;;  %v2102_v29 = vsel %vm284_vm3, %v1843_v34, %v1852_v39  ;;  %v2119_v34 = vsel %vm284_vm3, %v1855_v40, %v1863_v44 }
 0x34b   : > { %2760 = vst [vmem:[#allocation44_spill] sm:$0xff] %v2084_v31  ;;  %v2124_v35 = vsel %vm284_vm3, %v1863_v44, %v1861_v43  ;;  %v2139_v40 = vsel %vm357_vm4, %v1870_v47, %v1872_v48  ;;  %v2144_v44 = vsel %vm357_vm4, %v1872_v48, %v1874_v49  ;;  %v2161_v47 = vsel %vm357_vm4, %v1880_v52, %v1882_v54  ;;  %v2772_v31 = vld [vmem:[#allocation10_spill] sm:$0xff] }
 0x34c   : > { %v2166_v48 = vsel %vm357_vm4, %v1882_v54, %v1884_v55  ;;  %v2182_v52 = vsel %vm357_vm4, %v1886_v56, %v1888_v57  ;;  %v2187_v54 = vsel %vm430_vm5, %v1890_v58, %v1892_v59  ;;  %v2207_v57 = vsel %vm430_vm5, %v1900_v63, %v1904_v2 }
 0x34d   : > { %v2212_v58 = vsel %vm430_vm5, %v1904_v2, %v1902_v1  ;;  %v2234_v63 = vsel %vm503_vm6, %v1912_v7, %v1914_v8  ;;  %v2244_v2 = vsel %vm503_vm6, %v1918_v10, %v1916_v9  ;;  %v2270_v9 = vsel %vm503_vm6, %v1924_v15, %v1932_v19 }
 0x352   : > { %v895_v33 = vpop.permute.xlu0 %894 }
 0x353   : > { %v903_v53 = vmul.f32 %v895_v33, %v1766_v22  ;;  %v901_v36 = vmul.f32 %v895_v33, %v1760_v14  ;;  %v905_v0 = vmul.f32 %v895_v33, %v1770_v26  ;;  %v902_v27 = vmul.f32 %v895_v33, %v1758_v13 }
 0x355   : > { %925 = vrot.lane.b32.xlu0 %v903_v53, %s1646_s6  ;;  %921 = vrot.lane.b32.xlu1 %v901_v36, %s1646_s6  ;;  %v2107_v53 = vsel %vm284_vm3, %v1852_v39, %v1850_v38  ;;  %v2112_v36 = vsel %vm284_vm3, %v1850_v38, %v1857_v41  ;;  %v2129_v38 = vsel %vm284_vm3, %v1861_v43, %v1868_v46 }
 0x356   : > { %v2134_v39 = vsel %vm284_vm3, %v1868_v46, %v1866_v45  ;;  %v2151_v45 = vsel %vm357_vm4, %v1874_v49, %v1876_v50  ;;  %v2156_v46 = vsel %vm357_vm4, %v1876_v50, %v1878_v51  ;;  %v2173_v49 = vsel %vm357_vm4, %v1884_v55, %v1886_v56 }
 0x357   : > { %v2092_v25 = vpop.permute.xlu0 %971  ;;  %v2192_v55 = vsel %vm430_vm5, %v1892_v59, %v1894_v60  ;;  %v2202_v56 = vsel %vm430_vm5, %v1896_v61, %v1898_v62  ;;  %v2217_v59 = vsel %vm430_vm5, %v1902_v1, %v1908_v5  ;;  %v2229_v62 = vsel %vm503_vm6, %v1910_v6, %v1912_v7 }
 0x358   : > { %v2239_v1 = vsel %vm503_vm6, %v1914_v8, %v1918_v10  ;;  %v2260_v7 = vsel %vm503_vm6, %v1920_v11, %v1928_v17  ;;  %v2265_v8 = vsel %vm503_vm6, %v1928_v17, %v1924_v15  ;;  %v2275_v10 = vsel %vm576_vm7, %v1926_v16, %v1930_v18  ;;  %v2766_v16 = vld [vmem:[#allocation4_spill] sm:$0xff] }
 0x359   : > { %929 = vrot.lane.b32.xlu0 %v905_v0, %s1646_s6  ;;  %923 = vrot.lane.b32.xlu1 %v902_v27, %s1646_s6  ;;  %v904_v0 = vmul.f32 %v895_v33, %v1764_v21  ;;  %v2197_v27 = vsel %vm430_vm5, %v1894_v60, %v1896_v61  ;;  %v2224_v61 = vsel %vm430_vm5, %v1908_v5, %v1906_v4 }
 0x35a   : > { %v899_v41 = vpop.permute.xlu1 %898  ;;  %v2249_v4 = vsel %vm503_vm6, %v1922_v12, %v1920_v11  ;;  %v2280_v11 = vsel %vm576_vm7, %v1930_v18, %v1938_v24  ;;  %v2763_v12 = vld [vmem:[#allocation3_spill] sm:$0xff] }
 0x35b   : > { %v907_v43 = vmul.f32 %v899_v41, %v1758_v13  ;;  %v909_v50 = vmul.f32 %v899_v41, %v1764_v21  ;;  %v906_v51 = vmul.f32 %v899_v41, %v1760_v14  ;;  %v2285_v17 = vsel %vm576_vm7, %v1938_v24, %v2763_v12 }
 0x35c   : > { %v2168_v33 = vpop.permute.xlu0 %1113  ;;  %v908_v19 = vmul.f32 %v899_v41, %v1766_v22  ;;  %v910_v42 = vmul.f32 %v899_v41, %v1770_v26 }
 0x35d   : > { %2761 = vst [vmem:[#allocation45_spill] sm:$0xff] %v2168_v33  ;;  %927 = vrot.lane.b32.xlu1 %v904_v0, %s1646_s6  ;;  %933 = vrot.lane.b32.xlu0 %v907_v43, %s1646_s6  ;;  %v2764_v0 = vld [vmem:[#allocation6_spill] sm:$0xff]  ;;  %v2765_v43 = vld [vmem:[#allocation7_spill] sm:$0xff]  ;;  %v2769_v33 = vld [vmem:[#allocation8_spill] sm:$0xff] }
 0x35e   : > { %v2290_v15 = vsel %vm576_vm7, %v2763_v12, %v2764_v0  ;;  %v2771_v0 = vld [vmem:[#allocation11_spill] sm:$0xff] }
 0x35f   : > { %v2219_v60 = vpop.permute.xlu1 %967 }
 0x360   : > { %v974_v6 = vmul.f32 %v2219_v60, %v1760_v14 }
 0x361   : > { %937 = vrot.lane.b32.xlu0 %v909_v50, %s1646_s6  ;;  %931 = vrot.lane.b32.xlu1 %v906_v51, %s1646_s6  ;;  %v2253_v5 = vpop.permute.xlu0 %1190  ;;  %v2296_v50 = vsel %vm576_vm7, %v2766_v16, %v2765_v43  ;;  %v2767_v51 = vld [vmem:[#allocation5_spill] sm:$0xff]  ;;  %v2316_v16 = vsel %vm649_vm8, %v2772_v31, %v2771_v0 }
 0x362   : > { %2762 = vst [vmem:[#allocation46_spill] sm:$0xff] %v2253_v5  ;;  %v2301_v18 = vsel %vm576_vm7, %v2765_v43, %v2767_v51  ;;  %v2768_v5 = vld [vmem:[#allocation9_spill] sm:$0xff]  ;;  %v2321_v43 = vsel %vm649_vm8, %v2771_v0, %v2773_v30 }
 0x363   : > { %v2306_v24 = vsel %vm576_vm7, %v2767_v51, %v2768_v5  ;;  %v2311_v12 = vsel %vm576_vm7, %v2768_v5, %v2769_v33  ;;  %2774 = vst [vmem:[#allocation6_spill] sm:$0xff] %v2321_v43  ;;  %v2326_v51 = vsel %vm649_vm8, %v2773_v30, %v2775_v20  ;;  %v2777_v33 = vld [vmem:[#allocation14_spill] sm:$0xff]  ;;  %v2779_v5 = vld [vmem:[#allocation16_spill] sm:$0xff]  ;;  %v976_v30 = vmul.f32 %v2219_v60, %v1766_v22 }
 0x364   : > { %2770 = vst [vmem:[#allocation3_spill] sm:$0xff] %v2311_v12  ;;  %2776 = vst [vmem:[#allocation7_spill] sm:$0xff] %v2326_v51  ;;  %v2333_v31 = vsel %vm649_vm8, %v2775_v20, %v2777_v33  ;;  %v2338_v0 = vsel %vm649_vm8, %v2780_v28, %v2779_v5  ;;  %v2782_v33 = vld [vmem:[#allocation17_spill] sm:$0xff]  ;;  %v2784_v28 = vld [vmem:[#allocation18_spill] sm:$0xff]  ;;  %v975_v51 = vmul.f32 %v2219_v60, %v1758_v13 }
 0x365   : > { %935 = vrot.lane.b32.xlu1 %v908_v19, %s1646_s6  ;;  %994 = vrot.lane.b32.xlu0 %v974_v6, %s1647_s7  ;;  %2778 = vst [vmem:[#allocation4_spill] sm:$0xff] %v2333_v31  ;;  %2781 = vst [vmem:[#allocation5_spill] sm:$0xff] %v2338_v0  ;;  %v2350_v32 = vsel %vm649_vm8, %v2779_v5, %v2782_v33  ;;  %v2355_v41 = vsel %vm649_vm8, %v2782_v33, %v2784_v28  ;;  %v2786_v0 = vld [vmem:[#allocation19_spill] sm:$0xff]  ;;  %v2787_v33 = vld [vmem:[#allocation22_spill] sm:$0xff] }
 0x366   : > { %v187_v3 = vpop.permute.xlu0 %186  ;;  %2783 = vst [vmem:[#allocation9_spill] sm:$0xff] %v2350_v32  ;;  %2785 = vst [vmem:[#allocation8_spill] sm:$0xff] %v2355_v41  ;;  %v2360_v31 = vsel %vm649_vm8, %v2784_v28, %v2786_v0  ;;  %v2788_v41 = vld [vmem:[#allocation20_spill] sm:$0xff]  ;;  %v2789_v0 = vld [vmem:[#allocation21_spill] sm:$0xff] }
 0x367   : > { %v215_v19 = vmul.f32 %v1760_v14, %v187_v3  ;;  %v216_v6 = vmul.f32 %v1758_v13, %v187_v3  ;;  %v217_v37 = vmul.f32 %v1766_v22, %v187_v3  ;;  %v218_v20 = vmul.f32 %v1764_v21, %v187_v3 }
 0x368   : > { %v2372_v12 = vsel %vm722_vm0, %v2788_v41, %v2787_v33  ;;  %v2377_v28 = vsel %vm722_vm0, %v2787_v33, %v2789_v0 }
 0x369   : > { %v301_v3 = vadd.f32 %v2097_v23, %v215_v19  ;;  %v302_v43 = vadd.f32 %v2102_v29, %v216_v6  ;;  %v303_v5 = vadd.f32 %v2107_v53, %v217_v37  ;;  %v304_v32 = vadd.f32 %v2112_v36, %v218_v20  ;;  %939 = vrot.lane.b32.xlu1 %v910_v42, %s1646_s6 }
 0x36a   : > { %2790 = vst [vmem:[#allocation11_spill] sm:$0xff] %v2377_v28  ;;  %998 = vrot.lane.b32.xlu0 %v976_v30, %s1647_s7  ;;  %v192_v23 = vpop.permute.xlu0 %191  ;;  %v978_v37 = vmul.f32 %v2219_v60, %v1770_v26  ;;  %v980_v29 = vmul.f32 %v2092_v25, %v1758_v13 }
 0x36b   : > { %v374_v42 = vadd.f32 %v2139_v40, %v301_v3  ;;  %v375_v53 = vadd.f32 %v2144_v44, %v302_v43  ;;  %v376_v36 = vadd.f32 %v2151_v45, %v303_v5  ;;  %v377_v19 = vadd.f32 %v2156_v46, %v304_v32  ;;  %v2791_v3 = vld [vmem:[#allocation24_spill] sm:$0xff] }
 0x36c   : > { %v219_v6 = vmul.f32 %v1760_v14, %v192_v23  ;;  %v220_v20 = vmul.f32 %v1758_v13, %v192_v23  ;;  %v221_v30 = vmul.f32 %v1766_v22, %v192_v23  ;;  %v222_v41 = vmul.f32 %v1764_v21, %v192_v23 }
 0x36d   : > { %v447_v33 = vadd.f32 %v2187_v54, %v374_v42  ;;  %v448_v28 = vadd.f32 %v2192_v55, %v375_v53  ;;  %v449_v40 = vadd.f32 %v2197_v27, %v376_v36  ;;  %v450_v44 = vadd.f32 %v2202_v56, %v377_v19  ;;  %996 = vrot.lane.b32.xlu1 %v975_v51, %s1647_s7  ;;  %v2415_v51 = vpop.permute.xlu1 %1040 }
 0x36e   : > { %v305_v32 = vadd.f32 %v2119_v34, %v219_v6  ;;  %v306_v45 = vadd.f32 %v2124_v35, %v220_v20  ;;  %v307_v46 = vadd.f32 %v2129_v38, %v221_v30  ;;  %v308_v43 = vadd.f32 %v2134_v39, %v222_v41  ;;  %1002 = vrot.lane.b32.xlu0 %v978_v37, %s1647_s7  ;;  %v2792_v37 = vld [vmem:[#allocation23_spill] sm:$0xff]  ;;  %v2794_v30 = vld [vmem:[#allocation6_spill] sm:$0xff] }
 0x36f   : > { %v725_v54 = vsel %vm722_vm0, %v2789_v0, %v2791_v3  ;;  %v977_v55 = vmul.f32 %v2219_v60, %v1764_v21  ;;  %v979_v27 = vmul.f32 %v2092_v25, %v1760_v14  ;;  %v982_v34 = vmul.f32 %v2092_v25, %v1764_v21  ;;  %v2793_v6 = vld [vmem:[#allocation3_spill] sm:$0xff] }
 0x370   : > { %v378_v35 = vadd.f32 %v2161_v47, %v305_v32  ;;  %v379_v38 = vadd.f32 %v2166_v48, %v306_v45  ;;  %v380_v39 = vadd.f32 %v2173_v49, %v307_v46  ;;  %v381_v56 = vadd.f32 %v2182_v52, %v308_v43  ;;  %v2795_v41 = vld [vmem:[#allocation7_spill] sm:$0xff]  ;;  %v2799_v32 = vld [vmem:[#allocation8_spill] sm:$0xff] }
 0x371   : > { %v520_v5 = vadd.f32 %v2229_v62, %v447_v33  ;;  %v521_v60 = vadd.f32 %v2234_v63, %v448_v28  ;;  %v522_v0 = vadd.f32 %v2239_v1, %v449_v40  ;;  %v523_v23 = vadd.f32 %v2244_v2, %v450_v44  ;;  %1000 = vrot.lane.b32.xlu1 %v977_v55, %s1647_s7  ;;  %v2796_v40 = vld [vmem:[#allocation4_spill] sm:$0xff]  ;;  %v2797_v44 = vld [vmem:[#allocation5_spill] sm:$0xff]  ;;  %v2800_v45 = vld [vmem:[#allocation11_spill] sm:$0xff] }
 0x372   : > { %v451_v47 = vadd.f32 %v2207_v57, %v378_v35  ;;  %v452_v48 = vadd.f32 %v2212_v58, %v379_v38  ;;  %v453_v49 = vadd.f32 %v2217_v59, %v380_v39  ;;  %v454_v52 = vadd.f32 %v2224_v61, %v381_v56  ;;  %1006 = vrot.lane.b32.xlu0 %v980_v29, %s1647_s7  ;;  %v2801_v55 = vld [vmem:[#allocation25_spill] sm:$0xff]  ;;  %v2803_v38 = vld [vmem:[#allocation26_spill] sm:$0xff] }
 0x373   : > { %v726_v62 = vsel %vm722_vm0, %v2791_v3, %v2792_v37  ;;  %v981_v63 = vmul.f32 %v2092_v25, %v1766_v22  ;;  %v1047_v1 = vmul.f32 %v2415_v51, %v1760_v14  ;;  %v983_v57 = vmul.f32 %v2092_v25, %v1770_v26 }
 0x374   : > { %v524_v58 = vadd.f32 %v2249_v4, %v451_v47  ;;  %v525_v59 = vadd.f32 %v2260_v7, %v452_v48  ;;  %v526_v61 = vadd.f32 %v2265_v8, %v453_v49  ;;  %v527_v2 = vadd.f32 %v2270_v9, %v454_v52  ;;  %v2808_v48 = vld [vmem:[#allocation32_spill] sm:$0xff]  ;;  %v2809_v52 = vld [vmem:[#allocation33_spill] sm:$0xff] }
 0x375   : > { %1004 = vrot.lane.b32.xlu1 %v979_v27, %s1647_s7  ;;  %v1049_v28 = vmul.f32 %v2415_v51, %v1766_v22  ;;  %v1048_v29 = vmul.f32 %v2415_v51, %v1758_v13  ;;  %v1051_v42 = vmul.f32 %v2415_v51, %v1770_v26  ;;  %v593_v25 = vadd.f32 %v2275_v10, %v520_v5  ;;  %v2805_v5 = vld [vmem:[#allocation28_spill] sm:$0xff] }
 0x376   : > { %1010 = vrot.lane.b32.xlu0 %v982_v34, %s1647_s7  ;;  %v594_v4 = vadd.f32 %v2280_v11, %v521_v60  ;;  %v595_v7 = vadd.f32 %v2285_v17, %v522_v0  ;;  %v596_v8 = vadd.f32 %v2290_v15, %v523_v23  ;;  %v597_v9 = vadd.f32 %v2296_v50, %v524_v58  ;;  %v2798_v50 = vld [vmem:[#allocation9_spill] sm:$0xff]  ;;  %v2806_v0 = vld [vmem:[#allocation30_spill] sm:$0xff]  ;;  %v2812_v58 = vld [vmem:[#allocation35_spill] sm:$0xff] }
 0x377   : > { %v666_v53 = vadd.f32 %v2316_v16, %v593_v25  ;;  %v598_v36 = vadd.f32 %v2301_v18, %v525_v59  ;;  %v599_v19 = vadd.f32 %v2306_v24, %v526_v61  ;;  %v600_v20 = vadd.f32 %v2793_v6, %v527_v2  ;;  %v2802_v34 = vld [vmem:[#allocation29_spill] sm:$0xff]  ;;  %v2813_v61 = vld [vmem:[#allocation36_spill] sm:$0xff]  ;;  %v2814_v25 = vld [vmem:[#allocation38_spill] sm:$0xff] }
 0x378   : > { %v667_v10 = vadd.f32 %v2794_v30, %v594_v4  ;;  %v668_v33 = vadd.f32 %v2795_v41, %v595_v7  ;;  %v669_v11 = vadd.f32 %v2796_v40, %v596_v8  ;;  %v670_v17 = vadd.f32 %v2797_v44, %v597_v9  ;;  %v2815_v7 = vld [vmem:[#allocation39_spill] sm:$0xff]  ;;  %v2816_v9 = vld [vmem:[#allocation40_spill] sm:$0xff]  ;;  %v1045_v41 = vpop.permute.xlu1 %1044 }
 0x379   : > { %1008 = vrot.lane.b32.xlu1 %v981_v63, %s1647_s7  ;;  %v739_v15 = vadd.f32 %v2372_v12, %v666_v53  ;;  %v671_v16 = vadd.f32 %v2798_v50, %v598_v36  ;;  %v672_v18 = vadd.f32 %v2799_v32, %v599_v19  ;;  %v673_v24 = vadd.f32 %v2360_v31, %v600_v20  ;;  %v2804_v12 = vld [vmem:[#allocation27_spill] sm:$0xff]  ;;  %v2811_v63 = vld [vmem:[#allocation34_spill] sm:$0xff]  ;;  %v1259_v50 = vld [vmem:[%s2701_s2 + $0x8] sm:$0xff] }
 0x37a   : > { %1067 = vrot.lane.b32.xlu0 %v1047_v1, %s1648_s8  ;;  %v740_v46 = vadd.f32 %v2800_v45, %v667_v10  ;;  %v741_v43 = vadd.f32 %v725_v54, %v668_v33  ;;  %v742_v3 = vadd.f32 %v726_v62, %v669_v11  ;;  %v743_v27 = vadd.f32 %v2801_v55, %v670_v17  ;;  %v2807_v31 = vld [vmem:[#allocation31_spill] sm:$0xff]  ;;  %v2810_v54 = vld [vmem:[#allocation37_spill] sm:$0xff]  ;;  %v2818_v19 = vld [vmem:[#allocation42_spill] sm:$0xff] }
 0x37b   : > { %v812_v35 = vadd.f32 %v2802_v34, %v739_v15  ;;  %v744_v39 = vadd.f32 %v2803_v38, %v671_v16  ;;  %v745_v56 = vadd.f32 %v2804_v12, %v672_v18  ;;  %v746_v60 = vadd.f32 %v2805_v5, %v673_v24  ;;  %v2819_v20 = vld [vmem:[#allocation43_spill] sm:$0xff]  ;;  %v2820_v10 = vld [vmem:[#allocation44_spill] sm:$0xff]  ;;  %v2822_v12 = vld [vmem:[#allocation46_spill] sm:$0xff] }
 0x37c   : > { %v813_v23 = vadd.f32 %v2806_v0, %v740_v46  ;;  %v814_v47 = vadd.f32 %v2807_v31, %v741_v43  ;;  %v815_v49 = vadd.f32 %v2808_v48, %v742_v3  ;;  %v816_v37 = vadd.f32 %v2809_v52, %v743_v27  ;;  %v1118_v32 = vpop.permute.xlu1 %1117 }
 0x37d   : > { %1012 = vrot.lane.b32.xlu1 %v983_v57, %s1647_s7  ;;  %v2479_v62 = vadd.f32 %v2810_v54, %v812_v35  ;;  %v817_v1 = vadd.f32 %v2811_v63, %v744_v39  ;;  %v818_v59 = vadd.f32 %v2812_v58, %v745_v56  ;;  %v819_v2 = vadd.f32 %v2813_v61, %v746_v60  ;;  %v2817_v57 = vld [vmem:[#allocation41_spill] sm:$0xff]  ;;  %s1341_s7 = scalar_lea.vmem (%p1717_p5), %s2702_s3, %s1444_s4 }
 0x37e   : > { %1071 = vrot.lane.b32.xlu0 %v1049_v28, %s1648_s8  ;;  %v2486_v4 = vadd.f32 %v2814_v25, %v813_v23  ;;  %v2489_v8 = vadd.f32 %v2815_v7, %v814_v47  ;;  %v2492_v53 = vadd.f32 %v2816_v9, %v815_v49  ;;  %v2495_v36 = vadd.f32 %v2817_v57, %v816_v37 }
 0x37f   : > { %v2498_v6 = vadd.f32 %v2818_v19, %v817_v1  ;;  %v2501_v30 = vadd.f32 %v2819_v20, %v818_v59  ;;  %v2504_v28 = vadd.f32 %v2820_v10, %v819_v2  ;;  %v1050_v33 = vmul.f32 %v2415_v51, %v1764_v21 }
 0x380   : > { %v1053_v40 = vmul.f32 %v1045_v41, %v1758_v13  ;;  %v1052_v11 = vmul.f32 %v1045_v41, %v1760_v14  ;;  %v1055_v44 = vmul.f32 %v1045_v41, %v1764_v21  ;;  %v1054_v51 = vmul.f32 %v1045_v41, %v1766_v22  ;;  %v1187_v55 = vpop.permute.xlu1 %1186 }
 0x381   : > { %1069 = vrot.lane.b32.xlu1 %v1048_v29, %s1648_s8  ;;  %v1258_v29 = vld [vmem:[%s2701_s2] sm:$0xff]  ;;  %v1056_v15 = vmul.f32 %v1045_v41, %v1770_v26  ;;  %v1125_v24 = vmul.f32 %v1118_v32, %v1760_v14  ;;  %v1127_v46 = vmul.f32 %v1118_v32, %v1766_v22  ;;  %v1129_v3 = vmul.f32 %v1118_v32, %v1770_v26 }
 0x382   : > { %1075 = vrot.lane.b32.xlu0 %v1051_v42, %s1648_s8  ;;  %v2821_v42 = vld [vmem:[#allocation45_spill] sm:$0xff]  ;;  %v1126_v27 = vmul.f32 %v1118_v32, %v1758_v13  ;;  %v1194_v34 = vmul.f32 %v1187_v55, %v1758_v13  ;;  %v1128_v35 = vmul.f32 %v1118_v32, %v1764_v21  ;;  %v1196_v38 = vmul.f32 %v1187_v55, %v1764_v21 }
 0x383   : > { %v1121_v17 = vmul.f32 %v2821_v42, %v1758_v13  ;;  %v1123_v16 = vmul.f32 %v2821_v42, %v1764_v21  ;;  %v1120_v18 = vmul.f32 %v2821_v42, %v1760_v14  ;;  %v1122_v45 = vmul.f32 %v2821_v42, %v1766_v22 }
 0x384   : > { %v1124_v43 = vmul.f32 %v2821_v42, %v1770_v26  ;;  %v1193_v39 = vmul.f32 %v1187_v55, %v1760_v14  ;;  %v1198_v56 = vmul.f32 %v2822_v12, %v1760_v14  ;;  %v1195_v5 = vmul.f32 %v1187_v55, %v1766_v22 }
 0x385   : > { %1073 = vrot.lane.b32.xlu1 %v1050_v33, %s1648_s8  ;;  %v1200_v60 = vmul.f32 %v2822_v12, %v1766_v22  ;;  %v1197_v0 = vmul.f32 %v1187_v55, %v1770_v26  ;;  %v1202_v23 = vmul.f32 %v2822_v12, %v1770_v26  ;;  %v1199_v31 = vmul.f32 %v2822_v12, %v1758_v13 }
 0x386   : > { %1079 = vrot.lane.b32.xlu0 %v1053_v40, %s1648_s8  ;;  %v1201_v14 = vmul.f32 %v2822_v12, %v1764_v21 }
 0x389   : > { %1077 = vrot.lane.b32.xlu1 %v1052_v11, %s1648_s8 }
 0x38a   : > { %1083 = vrot.lane.b32.xlu0 %v1055_v44, %s1648_s8 }
 0x38d   : > { %1081 = vrot.lane.b32.xlu1 %v1054_v51, %s1648_s8 }
 0x38e   : > { %1262 = vperm.xlu0 %1564, %v1258_v29  }
 0x391   : > { %1085 = vrot.lane.b32.xlu1 %v1056_v15, %s1648_s8 }
 0x392   : > { %1142 = vrot.lane.b32.xlu0 %v1121_v17, %s1649_s22 }
 0x395   : > { %1267 = vperm.xlu1 %1565, %v1259_v50  }
 0x396   : > { %1146 = vrot.lane.b32.xlu0 %v1123_v16, %s1649_s22 }
 0x399   : > { %1140 = vrot.lane.b32.xlu1 %v1120_v18, %s1649_s22 }
 0x39a   : > { %1150 = vrot.lane.b32.xlu0 %v1125_v24, %s1649_s22 }
 0x39d   : > { %1144 = vrot.lane.b32.xlu1 %v1122_v45, %s1649_s22 }
 0x39e   : > { %1154 = vrot.lane.b32.xlu0 %v1127_v46, %s1649_s22 }
 0x3a1   : > { %1148 = vrot.lane.b32.xlu1 %v1124_v43, %s1649_s22 }
 0x3a2   : > { %1158 = vrot.lane.b32.xlu0 %v1129_v3, %s1649_s22 }
 0x3a5   : > { %1152 = vrot.lane.b32.xlu1 %v1126_v27, %s1649_s22 }
 0x3a6   : > { %1215 = vrot.lane.b32.xlu0 %v1194_v34, %s1650_s24 }
 0x3a9   : > { %1156 = vrot.lane.b32.xlu1 %v1128_v35, %s1649_s22 }
 0x3aa   : > { %1219 = vrot.lane.b32.xlu0 %v1196_v38, %s1650_s24 }
 0x3ad   : > { %1213 = vrot.lane.b32.xlu1 %v1193_v39, %s1650_s24 }
 0x3ae   : > { %1223 = vrot.lane.b32.xlu0 %v1198_v56, %s1650_s24 }
 0x3b1   : > { %1217 = vrot.lane.b32.xlu1 %v1195_v5, %s1650_s24 }
 0x3b2   : > { %1227 = vrot.lane.b32.xlu0 %v1200_v60, %s1650_s24 }
 0x3b5   : > { %1221 = vrot.lane.b32.xlu1 %v1197_v0, %s1650_s24 }
 0x3b6   : > { %1231 = vrot.lane.b32.xlu0 %v1202_v23, %s1650_s24 }
 0x3b9   : > { %1225 = vrot.lane.b32.xlu1 %v1199_v31, %s1650_s24 }
 0x3bd   : > { %1229 = vrot.lane.b32.xlu1 %v1201_v14, %s1650_s24 }
 0x3c7   : > { %v926_v47 = vpop.permute.xlu0 %925  ;;  %v922_v48 = vpop.permute.xlu1 %921 }
 0x3cb   : > { %v930_v22 = vpop.permute.xlu0 %929  ;;  %v924_v49 = vpop.permute.xlu1 %923 }
 0x3cc   : > { %v942_v52 = vsel %vm941_vm9, %v922_v48, %v924_v49  ;;  %v943_v37 = vsel %vm941_vm9, %v924_v49, %v926_v47 }
 0x3cd   : > { %v958_v26 = vadd.f32 %v942_v52, %v2479_v62  ;;  %v2561_v54 = vadd.f32 %v943_v37, %v2486_v4 }
 0x3cf   : > { %v934_v13 = vpop.permute.xlu0 %933  ;;  %v928_v63 = vpop.permute.xlu1 %927 }
 0x3d0   : > { %v944_v1 = vsel %vm941_vm9, %v926_v47, %v928_v63  ;;  %v945_v21 = vsel %vm941_vm9, %v928_v63, %v930_v22 }
 0x3d1   : > { %v2566_v58 = vadd.f32 %v944_v1, %v2489_v8  ;;  %v2569_v59 = vadd.f32 %v945_v21, %v2492_v53 }
 0x3d3   : > { %v938_v61 = vpop.permute.xlu0 %937  ;;  %v932_v2 = vpop.permute.xlu1 %931 }
 0x3d4   : > { %v946_v25 = vsel %vm941_vm9, %v932_v2, %v934_v13 }
 0x3d5   : > { %v2573_v62 = vadd.f32 %v946_v25, %v2495_v36 }
 0x3d7   : > { %v995_v4 = vpop.permute.xlu0 %994  ;;  %v936_v7 = vpop.permute.xlu1 %935 }
 0x3d8   : > { %v947_v9 = vsel %vm941_vm9, %v934_v13, %v936_v7  ;;  %v948_v57 = vsel %vm941_vm9, %v936_v7, %v938_v61 }
 0x3d9   : > { %v2578_v19 = vadd.f32 %v947_v9, %v2498_v6  ;;  %v2581_v8 = vadd.f32 %v948_v57, %v2501_v30 }
 0x3db   : > { %v940_v53 = vpop.permute.xlu1 %939 }
 0x3dc   : > { %v999_v20 = vpop.permute.xlu0 %998  ;;  %v949_v10 = vsel %vm941_vm9, %v938_v61, %v940_v53 }
 0x3dd   : > { %v2585_v41 = vadd.f32 %v949_v10, %v2504_v28 }
 0x3df   : > { %v997_v36 = vpop.permute.xlu1 %996 }
 0x3e0   : > { %v1003_v33 = vpop.permute.xlu0 %1002  ;;  %v1015_v56 = vsel %vm1014_vm10, %v995_v4, %v997_v36  ;;  %v1016_v0 = vsel %vm1014_vm10, %v997_v36, %v999_v20 }
 0x3e1   : > { %v1031_v23 = vadd.f32 %v1015_v56, %v958_v26  ;;  %v1032_v49 = vadd.f32 %v1016_v0, %v2561_v54 }
 0x3e3   : > { %v1001_v40 = vpop.permute.xlu1 %1000 }
 0x3e4   : > { %v1007_v11 = vpop.permute.xlu0 %1006  ;;  %v1017_v14 = vsel %vm1014_vm10, %v999_v20, %v1001_v40  ;;  %v1018_v52 = vsel %vm1014_vm10, %v1001_v40, %v1003_v33 }
 0x3e5   : > { %v1033_v63 = vadd.f32 %v1017_v14, %v2566_v58  ;;  %v1034_v58 = vadd.f32 %v1018_v52, %v2569_v59 }
 0x3e7   : > { %v1005_v44 = vpop.permute.xlu1 %1004 }
 0x3e8   : > { %v1011_v29 = vpop.permute.xlu0 %1010  ;;  %v1019_v26 = vsel %vm1014_vm10, %v1005_v44, %v1007_v11 }
 0x3e9   : > { %v1035_v20 = vadd.f32 %v1019_v26, %v2573_v62 }
 0x3eb   : > { %v1009_v51 = vpop.permute.xlu1 %1008 }
 0x3ec   : > { %v1068_v42 = vpop.permute.xlu0 %1067  ;;  %v1020_v1 = vsel %vm1014_vm10, %v1007_v11, %v1009_v51  ;;  %v1021_v2 = vsel %vm1014_vm10, %v1009_v51, %v1011_v29 }
 0x3ed   : > { %v1036_v10 = vadd.f32 %v1020_v1, %v2578_v19 }
 0x3ef   : > { %v1013_v6 = vpop.permute.xlu1 %1012 }
 0x3f0   : > { %v1072_v17 = vpop.permute.xlu0 %1071  ;;  %v1022_v7 = vsel %vm1014_vm10, %v1011_v29, %v1013_v6 }
 0x3f1   : > { %v1038_v6 = vadd.f32 %v1022_v7, %v2585_v41 }
 0x3f3   : > { %v1070_v15 = vpop.permute.xlu1 %1069 }
 0x3f4   : > { %v1076_v30 = vpop.permute.xlu0 %1075  ;;  %v1088_v60 = vsel %vm1087_vm11, %v1068_v42, %v1070_v15  ;;  %v1089_v37 = vsel %vm1087_vm11, %v1070_v15, %v1072_v17  ;;  %v1037_v42 = vadd.f32 %v1021_v2, %v2581_v8 }
 0x3f5   : > { %v1104_v48 = vadd.f32 %v1088_v60, %v1031_v23  ;;  %v1105_v9 = vadd.f32 %v1089_v37, %v1032_v49 }
 0x3f7   : > { %v1074_v50 = vpop.permute.xlu1 %1073 }
 0x3f8   : > { %v1080_v16 = vpop.permute.xlu0 %1079  ;;  %v1090_v13 = vsel %vm1087_vm11, %v1072_v17, %v1074_v50  ;;  %v1091_v36 = vsel %vm1087_vm11, %v1074_v50, %v1076_v30 }
 0x3f9   : > { %v1106_v57 = vadd.f32 %v1090_v13, %v1033_v63  ;;  %v1107_v50 = vadd.f32 %v1091_v36, %v1034_v58 }
 0x3fb   : > { %v1078_v32 = vpop.permute.xlu1 %1077 }
 0x3fc   : > { %v2587_v18 = vpop.permute.xlu0 %1083  ;;  %v1092_v33 = vsel %vm1087_vm11, %v1078_v32, %v1080_v16 }
 0x3fd   : > { %v1108_v32 = vadd.f32 %v1092_v33, %v1035_v20 }
 0x3ff   : > { %v2589_v24 = vpop.permute.xlu1 %1081 }
 0x400   : > { %v1093_v19 = vsel %vm1087_vm11, %v1080_v16, %v2589_v24  ;;  %v1094_v8 = vsel %vm1087_vm11, %v2589_v24, %v2587_v18 }
 0x401   : > { %v1110_v60 = vadd.f32 %v1094_v8, %v1037_v42 }
 0x403   : > { %v2593_v45 = vpop.permute.xlu1 %1085 }
 0x404   : > { %v1095_v24 = vsel %vm1087_vm11, %v2587_v18, %v2593_v45 }
 0x405   : > { %v1111_v26 = vadd.f32 %v1095_v24, %v1038_v6 }
 0x40d   : > { %v2591_v28 = vpop.permute.xlu0 %1262 }
 0x411   : > { %v1143_v46 = vpop.permute.xlu0 %1142 }
 0x414   : > { %v2595_v43 = vpop.permute.xlu1 %1267 }
 0x415   : > { %v1147_v3 = vpop.permute.xlu0 %1146 }
 0x418   : > { %v1141_v55 = vpop.permute.xlu1 %1140 }
 0x419   : > { %v1151_v27 = vpop.permute.xlu0 %1150  ;;  %v1161_v47 = vsel %vm1160_vm12, %v1141_v55, %v1143_v46 }
 0x41a   : > { %v1177_v21 = vadd.f32 %v1161_v47, %v1104_v48 }
 0x41c   : > { %v1145_v34 = vpop.permute.xlu1 %1144 }
 0x41d   : > { %v2597_v35 = vpop.permute.xlu0 %1154  ;;  %v1162_v25 = vsel %vm1160_vm12, %v1143_v46, %v1145_v34  ;;  %v1163_v54 = vsel %vm1160_vm12, %v1145_v34, %v1147_v3 }
 0x41e   : > { %v1178_v40 = vadd.f32 %v1162_v25, %v1105_v9  ;;  %v1179_v11 = vadd.f32 %v1163_v54, %v1106_v57 }
 0x420   : > { %v1149_v38 = vpop.permute.xlu1 %1148 }
 0x421   : > { %v2599_v39 = vpop.permute.xlu0 %1158  ;;  %v1164_v17 = vsel %vm1160_vm12, %v1147_v3, %v1149_v38  ;;  %v1109_v38 = vadd.f32 %v1093_v19, %v1036_v10 }
 0x422   : > { %v1180_v56 = vadd.f32 %v1164_v17, %v1107_v50 }
 0x424   : > { %v1153_v12 = vpop.permute.xlu1 %1152 }
 0x425   : > { %v1216_v5 = vpop.permute.xlu0 %1215  ;;  %v1165_v41 = vsel %vm1160_vm12, %v1151_v27, %v1153_v12  ;;  %v1166_v46 = vsel %vm1160_vm12, %v1153_v12, %v2597_v35 }
 0x426   : > { %v1181_v0 = vadd.f32 %v1165_v41, %v1108_v32  ;;  %v1182_v23 = vadd.f32 %v1166_v46, %v1109_v38 }
 0x428   : > { %v2604_v31 = vpop.permute.xlu1 %1156 }
 0x429   : > { %v1220_v22 = vpop.permute.xlu0 %1219  ;;  %v1167_v14 = vsel %vm1160_vm12, %v2597_v35, %v2604_v31  ;;  %v1168_v48 = vsel %vm1160_vm12, %v2604_v31, %v2599_v39 }
 0x42a   : > { %v1183_v31 = vadd.f32 %v1167_v14, %v1110_v60 }
 0x42c   : > { %v1214_v61 = vpop.permute.xlu1 %1213 }
 0x42d   : > { %v1234_v4 = vsel %vm1233_vm13, %v1214_v61, %v1216_v5  ;;  %v1224_v44 = vpop.permute.xlu0 %1223 }
 0x42e   : > { %v1250_v53 = vadd.f32 %v1234_v4, %v1177_v21  ;;  %v1184_v21 = vadd.f32 %v1168_v48, %v1111_v26 }
 0x430   : > { %v1270_v51 = vadd.f32 %v2591_v28, %v1250_v53  ;;  %v1218_v29 = vpop.permute.xlu1 %1217 }
 0x431   : > { %v1235_v59 = vsel %vm1233_vm13, %v1216_v5, %v1218_v29  ;;  %v1236_v62 = vsel %vm1233_vm13, %v1218_v29, %v1220_v22  ;;  %v1228_v27 = vpop.permute.xlu0 %1227 }
 0x432   : > { %v1251_v15 = vadd.f32 %v1235_v59, %v1178_v40  ;;  %v1252_v30 = vadd.f32 %v1236_v62, %v1179_v11  ;;  %v1286_v55 = vmul.f32 0.01, %v1270_v51  ;;  %vm1278_vm14 = vcmp.ge.f32.partialorder %v1270_v51, 0.0 }
 0x434   : > { %v1271_v34 = vadd.f32 %v2591_v28, %v1251_v15  ;;  %v1272_v16 = vadd.f32 %v2591_v28, %v1252_v30  ;;  %v1222_v3 = vpop.permute.xlu1 %1221 }
 0x435   : > { %v1237_v5 = vsel %vm1233_vm13, %v1220_v22, %v1222_v3  ;;  %v1294_v22 = vsel %vm1278_vm14, %v1270_v51, %v1286_v55  ;;  %v1232_v61 = vpop.permute.xlu0 %1231 }
 0x436   : > { %vm1279_vm15 = vcmp.ge.f32.partialorder %v1271_v34, 0.0  ;;  %v1287_v12 = vmul.f32 0.01, %v1271_v34  ;;  %v1253_v47 = vadd.f32 %v1237_v5, %v1180_v56  ;;  %v1288_v49 = vmul.f32 0.01, %v1272_v16 }
 0x437   : > { %vm1280_vm0 = vcmp.ge.f32.partialorder %v1272_v16, 0.0 }
 0x438   : > { %v1295_v52 = vsel %vm1279_vm15, %v1271_v34, %v1287_v12  ;;  %v1226_v37 = vpop.permute.xlu1 %1225  ;;  %v1273_v18 = vadd.f32 %v2591_v28, %v1253_v47  ;;  %v1296_v54 = vsel %vm1280_vm0, %v1272_v16, %v1288_v49 }
 0x439   : > { %v1447_v13 = vpack.c.bf16 %v1295_v52, %v1294_v22  ;;  %v1238_v45 = vsel %vm1233_vm13, %v1224_v44, %v1226_v37  ;;  %v1239_v63 = vsel %vm1233_vm13, %v1226_v37, %v1228_v27 }
 0x43a   : > { %v1254_v1 = vadd.f32 %v1238_v45, %v1181_v0  ;;  %v1255_v35 = vadd.f32 %v1239_v63, %v1182_v23  ;;  %vm1281_vm1 = vcmp.ge.f32.partialorder %v1273_v18, 0.0  ;;  %v1289_v39 = vmul.f32 0.01, %v1273_v18 }
 0x43b   : > { %1326 = vst [vmem:[%s2655_s26] sm:$0xff] %v1447_v13 }
 0x43c   : > { %v1274_v28 = vadd.f32 %v2595_v43, %v1254_v1  ;;  %v1275_v2 = vadd.f32 %v2595_v43, %v1255_v35  ;;  %v1230_v25 = vpop.permute.xlu1 %1229  ;;  %v1297_v4 = vsel %vm1281_vm1, %v1273_v18, %v1289_v39 }
 0x43d   : > { %v1240_v7 = vsel %vm1233_vm13, %v1228_v27, %v1230_v25  ;;  %v1241_v9 = vsel %vm1233_vm13, %v1230_v25, %v1232_v61  ;;  %v1448_v57 = vpack.c.bf16 %v1297_v4, %v1296_v54 }
 0x43e   : > { %vm1282_vm2 = vcmp.ge.f32.partialorder %v1274_v28, 0.0  ;;  %vm1283_vm3 = vcmp.ge.f32.partialorder %v1275_v2, 0.0  ;;  %v1290_v53 = vmul.f32 0.01, %v1274_v28  ;;  %v1291_v58 = vmul.f32 0.01, %v1275_v2 }
 0x43f   : > { %v1256_v20 = vadd.f32 %v1240_v7, %v1183_v31  ;;  %v1257_v10 = vadd.f32 %v1241_v9, %v1184_v21  ;;  %1327 = vst [vmem:[%s2655_s26 + $0x8] sm:$0xff] %v1448_v57 }
 0x440   : > { %v1298_v36 = vsel %vm1282_vm2, %v1274_v28, %v1290_v53  ;;  %v1299_v33 = vsel %vm1283_vm3, %v1275_v2, %v1291_v58 }
 0x441   : > { %v1276_v40 = vadd.f32 %v2595_v43, %v1256_v20  ;;  %v1277_v11 = vadd.f32 %v2595_v43, %v1257_v10  ;;  %v1449_v44 = vpack.c.bf16 %v1299_v33, %v1298_v36 }
 0x442   : > { %1336 = sbr.rel (!%p1717_p5) target bundleno = 1105 (0x451), region = 36  ;;  %v1354_v43 = vld [vmem:[%s2655_s26] sm:$0xff] (%p1717_p5) }
 0x443   : > { %vm1284_vm4 = vcmp.ge.f32.partialorder %v1276_v40, 0.0  ;;  %vm1285_vm5 = vcmp.ge.f32.partialorder %v1277_v11, 0.0  ;;  %v1292_v51 = vmul.f32 0.01, %v1276_v40  ;;  %v1293_v29 = vmul.f32 0.01, %v1277_v11  ;;  %1355 = vst [vmem:[%s1341_s7] sm:$0xff] (%p1717_p5), %v1354_v43 }
 0x444   : > { %1328 = vst [vmem:[%s2655_s26 + $0x10] sm:$0xff] %v1449_v44 }
 0x445   : > { %v1300_v42 = vsel %vm1284_vm4, %v1276_v40, %v1292_v51  ;;  %v1301_v6 = vsel %vm1285_vm5, %v1277_v11, %v1293_v29 }
 0x446   : > { %v1450_v59 = vpack.c.bf16 %v1301_v6, %v1300_v42  ;;  %v1356_v62 = vld [vmem:[%s2655_s26 + $0x8] sm:$0xff] (%p1717_p5) }
 0x447   : > { %1357 = vst [vmem:[%s1341_s7 + $0x8] sm:$0xff] (%p1717_p5), %v1356_v62 }
 0x448   : > { %1329 = vst [vmem:[%s2655_s26 + $0x18] sm:$0xff] %v1450_v59 }
 0x44b   : > { %v1358_v19 = vld [vmem:[%s2655_s26 + $0x10] sm:$0xff] }
 0x44c   : > { %1359 = vst [vmem:[%s1341_s7 + $0xa0] sm:$0xff] %v1358_v19 }
 0x44f   : > { %v1360_v17 = vld [vmem:[%s2655_s26 + $0x18] sm:$0xff] }
 0x450   : > { %1361 = vst [vmem:[%s1341_s7 + $0xa8] sm:$0xff] %v1360_v17 }
 0x451 PF: > { %s13_s18 = sadd.s32 1, %s1620_s18   ;;  %s2823_s12 = smov %s1600_s13 }
 0x452   : > { %p10_p10 = scmp.ge.s32.totalorder %s13_s18, 22   ;;  %s2824_s13 = smov %s1728_s27 }
 0x453   : > { %s2825_s14 = smov %s1612_s16  ;;  %s2826_s15 = smov %s1616_s17 }
 0x454   : > { %s2827_s16 = smov %s2830_s19  ;;  %s2828_s17 = smov %s2834_s20 }
 0x455   :  { %12 = sbr.rel (!%p10_p10) target bundleno = 4 (0x4), region = 86 }

</bundles_post_ra>
